<compile_context>
chip_gen: v7x
topology: tpu7x:2x2x1
jax: 0.10.0
libtpu: 0.0.40
codegen_flags: <defaults>
</compile_context>

<pallas_src>
import functools
import math

import jax
import jax.numpy as jnp
from jax.experimental import pallas as pl
from jax.experimental.pallas import tpu as pltpu

# ---------------- model hyper-params (from the PyTorch module) --------------
NTOKEN = 16        # vocab size
EMB = 32           # emb_size
NHEAD = 2
NHID = 50
NLAYERS = 2
LN_EPS = 1e-5

NHID_PAD = 128     # lane-dense padding of the FF hidden dim (zeros are inert)
NTOKEN_PAD = 128   # lane-dense padding of the decoder output (sliced outside)

# TODO(synk): dropout (p=0.1 in TransformerEncoderLayer) is identity in eval
# mode and is omitted here.  No src_mask is passed in the reference forward,
# so attention is full / bidirectional (matches the given PyTorch code).


# ------------------------------ fused kernel --------------------------------
def _layer_norm(y, g, b):
    mean = jnp.mean(y, axis=-1, keepdims=True)
    var = jnp.mean(jnp.square(y - mean), axis=-1, keepdims=True)
    return (y - mean) * jax.lax.rsqrt(var + LN_EPS) * g + b


def _fused_forward_kernel(tok_ref, pe_ref, emb_ref,
                          in_w_ref, in_b_ref, out_w_ref, out_b_ref,
                          lin1_w_ref, lin1_b_ref, lin2_w_ref, lin2_b_ref,
                          ln1_g_ref, ln1_b_ref, ln2_g_ref, ln2_b_ref,
                          dec_w_ref, dec_b_ref, o_ref):
    """One grid program == one batch element.  Activations are (S, E)."""
    S = pe_ref.shape[0]
    E = EMB
    Dh = E // NHEAD

    # ---- embedding lookup as a one-hot matmul (sqrt(E) folded into the bf16
    # ---- table), then add the positional encoding (f32).
    tok = tok_ref[0]                                             # (S, 1) i32
    vocab_iota = jax.lax.broadcasted_iota(jnp.int32, (S, NTOKEN), 1)
    onehot = (vocab_iota == tok).astype(jnp.bfloat16)
    x = jnp.dot(onehot, emb_ref[...], preferred_element_type=jnp.float32)
    x = x + pe_ref[...]                                          # (S, E) f32

    contract_last = (((1,), (1,)), ((), ()))    # q @ k^T without explicit .T

    for li in range(NLAYERS):                   # NLAYERS=2, unrolled at trace
        # -------- self-attention (q already pre-scaled by 1/sqrt(Dh) in in_w)
        xb = x.astype(jnp.bfloat16)
        qkv = jnp.dot(xb, in_w_ref[li], preferred_element_type=jnp.float32)
        qkv = qkv + in_b_ref[li]                                 # (S, 3E) f32
        out_w = out_w_ref[li]                                    # (E, E) bf16

        attn = None
        for h in range(NHEAD):
            qh = qkv[:, h * Dh:(h + 1) * Dh].astype(jnp.bfloat16)
            kh = qkv[:, E + h * Dh:E + (h + 1) * Dh].astype(jnp.bfloat16)
            vh = qkv[:, 2 * E + h * Dh:2 * E + (h + 1) * Dh].astype(jnp.bfloat16)
            s = jax.lax.dot_general(qh, kh, contract_last,
                                    preferred_element_type=jnp.float32)  # (S,S)
            s = s - jnp.max(s, axis=-1, keepdims=True)
            p = jnp.exp(s)
            p = p / jnp.sum(p, axis=-1, keepdims=True)           # exact recip
            ctx = jnp.dot(p.astype(jnp.bfloat16), vh,
                          preferred_element_type=jnp.float32)    # (S, Dh)
            # fold the head-concat into the output projection:
            # concat_h(ctx_h) @ W_out == sum_h ctx_h @ W_out[h*Dh:(h+1)*Dh, :]
            part = jnp.dot(ctx.astype(jnp.bfloat16),
                           out_w[h * Dh:(h + 1) * Dh, :],
                           preferred_element_type=jnp.float32)
            attn = part if attn is None else attn + part
        attn = attn + out_b_ref[li]

        # -------- residual + LayerNorm 1 (post-norm, PyTorch default), f32
        x = _layer_norm(x + attn, ln1_g_ref[li], ln1_b_ref[li])

        # -------- feed-forward (hidden padded to NHID_PAD; pads are zeros)
        ff = jnp.dot(x.astype(jnp.bfloat16), lin1_w_ref[li],
                     preferred_element_type=jnp.float32)
        ff = jnp.maximum(ff + lin1_b_ref[li], 0.0)
        ff = jnp.dot(ff.astype(jnp.bfloat16), lin2_w_ref[li],
                     preferred_element_type=jnp.float32)
        ff = ff + lin2_b_ref[li]

        # -------- residual + LayerNorm 2
        x = _layer_norm(x + ff, ln2_g_ref[li], ln2_b_ref[li])

    # ---- decoder: lane-dense (S, NTOKEN_PAD) output, sliced in the wrapper
    logits = jnp.dot(x.astype(jnp.bfloat16), dec_w_ref[...],
                     preferred_element_type=jnp.float32)
    o_ref[0] = logits + dec_b_ref[...]


# ------------------------------ parameter setup ------------------------------
def make_positional_encoding(max_len, d_model):
    position = jnp.arange(max_len, dtype=jnp.float32)[:, None]
    div_term = jnp.exp(jnp.arange(0, d_model, 2, dtype=jnp.float32)
                       * (-math.log(10000.0) / d_model))
    pe = jnp.zeros((max_len, d_model), dtype=jnp.float32)
    pe = pe.at[:, 0::2].set(jnp.sin(position * div_term))
    pe = pe.at[:, 1::2].set(jnp.cos(position * div_term))
    return pe  # (max_len, d_model)


def init_params(key):
    keys = jax.random.split(key, 2 + NLAYERS)
    initrange = 0.1
    Dh = EMB // NHEAD
    q_scale = 1.0 / math.sqrt(Dh)

    params = {}
    # fold sqrt(E) into the embedding table; store bf16 (MXU operand)
    emb = jax.random.uniform(keys[0], (NTOKEN, EMB), jnp.float32,
                             -initrange, initrange)
    params["emb_table_scaled"] = (emb * math.sqrt(EMB)).astype(jnp.bfloat16)

    # decoder: pre-transposed, zero-padded to a lane-dense column count, bf16
    dec_w = jax.random.uniform(keys[1], (NTOKEN, EMB), jnp.float32,
                               -initrange, initrange)
    params["dec_w_t"] = jnp.zeros((EMB, NTOKEN_PAD), jnp.float32) \
        .at[:, :NTOKEN].set(dec_w.T).astype(jnp.bfloat16)
    params["dec_b"] = jnp.zeros((1, NTOKEN_PAD), jnp.float32)

    in_w, in_b, out_w, out_b = [], [], [], []
    l1w, l1b, l2w, l2b = [], [], [], []
    ln1g, ln1b, ln2g, ln2b = [], [], [], []
    for li in range(NLAYERS):
        lk = jax.random.split(keys[2 + li], 4)
        s_attn = 1.0 / math.sqrt(EMB)
        s_ff2 = 1.0 / math.sqrt(NHID)
        # stored pre-transposed: x @ W_t == x @ W.T in PyTorch
        w_in = jax.random.uniform(lk[0], (EMB, 3 * EMB), jnp.float32,
                                  -s_attn, s_attn)
        # fold the 1/sqrt(Dh) query scale into the q columns (q bias is zero)
        w_in = w_in.at[:, :EMB].multiply(q_scale)
        in_w.append(w_in.astype(jnp.bfloat16))
        in_b.append(jnp.zeros((1, 3 * EMB), jnp.float32))
        out_w.append(jax.random.uniform(lk[1], (EMB, EMB), jnp.float32,
                                        -s_attn, s_attn).astype(jnp.bfloat16))
        out_b.append(jnp.zeros((1, EMB), jnp.float32))
        # FF weights zero-padded to NHID_PAD (zeros inert through ReLU + lin2)
        w1 = jax.random.uniform(lk[2], (EMB, NHID), jnp.float32, -s_attn, s_attn)
        l1w.append(jnp.zeros((EMB, NHID_PAD), jnp.float32)
                   .at[:, :NHID].set(w1).astype(jnp.bfloat16))
        l1b.append(jnp.zeros((1, NHID_PAD), jnp.float32))
        w2 = jax.random.uniform(lk[3], (NHID, EMB), jnp.float32, -s_ff2, s_ff2)
        l2w.append(jnp.zeros((NHID_PAD, EMB), jnp.float32)
                   .at[:NHID, :].set(w2).astype(jnp.bfloat16))
        l2b.append(jnp.zeros((1, EMB), jnp.float32))
        ln1g.append(jnp.ones((1, EMB), jnp.float32))
        ln1b.append(jnp.zeros((1, EMB), jnp.float32))
        ln2g.append(jnp.ones((1, EMB), jnp.float32))
        ln2b.append(jnp.zeros((1, EMB), jnp.float32))

    params.update(
        in_w=jnp.stack(in_w), in_b=jnp.stack(in_b),
        out_w=jnp.stack(out_w), out_b=jnp.stack(out_b),
        lin1_w=jnp.stack(l1w), lin1_b=jnp.stack(l1b),
        lin2_w=jnp.stack(l2w), lin2_b=jnp.stack(l2b),
        ln1_g=jnp.stack(ln1g), ln1_b=jnp.stack(ln1b),
        ln2_g=jnp.stack(ln2g), ln2_b=jnp.stack(ln2b),
    )
    return params


# ------------------------------ forward pass ---------------------------------
def _bcast_spec(shape):
    """Whole-array block, re-used (same block index) at every grid step."""
    if len(shape) == 2:
        return pl.BlockSpec(shape, lambda b: (0, 0))
    return pl.BlockSpec(shape, lambda b: (0, 0, 0))


@jax.jit
def transformer_forward(params, src, pe_table):
    """src: (S, B) int tokens; pe_table: (max_len, E).
    Returns logits (S, B, NTOKEN)."""
    S, B = src.shape
    Dh = EMB // NHEAD
    tok = src.astype(jnp.int32).T.reshape(B, S, 1)   # b-major per-batch rows
    pe = pe_table[:S]                                # (S, E), shared by all b

    inputs = (tok, pe, params["emb_table_scaled"],
              params["in_w"], params["in_b"], params["out_w"], params["out_b"],
              params["lin1_w"], params["lin1_b"],
              params["lin2_w"], params["lin2_b"],
              params["ln1_g"], params["ln1_b"],
              params["ln2_g"], params["ln2_b"],
              params["dec_w_t"], params["dec_b"])

    in_specs = ([pl.BlockSpec((1, S, 1), lambda b: (b, 0, 0))]
                + [_bcast_spec(a.shape) for a in inputs[1:]])
    out_specs = pl.BlockSpec((1, S, NTOKEN_PAD), lambda b: (b, 0, 0))

    # advisory cost estimate (helps XLA schedule the custom call)
    per_layer = (2 * S * EMB * 3 * EMB
                 + NHEAD * (4 * S * S * Dh + 2 * S * Dh * EMB)
                 + 4 * S * EMB * NHID_PAD)
    flops = int(B * (2 * S * NTOKEN * EMB + NLAYERS * per_layer
                     + 2 * S * EMB * NTOKEN_PAD))
    transcendentals = int(B * NLAYERS * NHEAD * S * S)
    bytes_accessed = int(sum(int(a.size) * a.dtype.itemsize for a in inputs)
                         + B * S * NTOKEN_PAD * 4)

    out = pl.pallas_call(
        _fused_forward_kernel,
        grid=(B,),
        out_shape=jax.ShapeDtypeStruct((B, S, NTOKEN_PAD), jnp.float32),
        in_specs=in_specs,
        out_specs=out_specs,
        compiler_params=pltpu.CompilerParams(
            dimension_semantics=("parallel",),          # shards over v7x's 2 TCs
            vmem_limit_bytes=32 * 1024 * 1024),
        cost_estimate=pl.CostEstimate(flops=flops,
                                      transcendentals=transcendentals,
                                      bytes_accessed=bytes_accessed),
    )(*inputs)
    # (B, S, Vpad) -> (S, B, V); fuses with the custom call under jit
    return jnp.transpose(out, (1, 0, 2))[:, :, :NTOKEN]


# ------------------------------ main ------------------------------------------
if __name__ == "__main__":
    key = jax.random.PRNGKey(0)
    pkey, dkey = jax.random.split(key)

    params = init_params(pkey)
    pe_table = make_positional_encoding(5000, EMB)

    SEQ, BATCH = 8, 2
    src = jax.random.randint(dkey, (SEQ, BATCH), 0, NTOKEN, dtype=jnp.int32)

    out = transformer_forward(params, src, pe_table)
    out = jax.block_until_ready(out)
    assert out.shape == (SEQ, BATCH, NTOKEN), out.shape
    assert bool(jnp.all(jnp.isfinite(out)))
    print("KERNEL_OK")
</pallas_src>

<mosaic_0001>
module attributes {stable_mosaic.version = 11 : i64} {
  func.func @_fused_forward_kernel(%arg0: i32, %arg1: memref<1x8x1xi32, #tpu.memory_space<vmem>>, %arg2: memref<8x32xf32, #tpu.memory_space<vmem>>, %arg3: memref<16x32xbf16, #tpu.memory_space<vmem>>, %arg4: memref<2x32x96xbf16, #tpu.memory_space<vmem>>, %arg5: memref<2x1x96xf32, #tpu.memory_space<vmem>>, %arg6: memref<2x32x32xbf16, #tpu.memory_space<vmem>>, %arg7: memref<2x1x32xf32, #tpu.memory_space<vmem>>, %arg8: memref<2x32x128xbf16, #tpu.memory_space<vmem>>, %arg9: memref<2x1x128xf32, #tpu.memory_space<vmem>>, %arg10: memref<2x128x32xbf16, #tpu.memory_space<vmem>>, %arg11: memref<2x1x32xf32, #tpu.memory_space<vmem>>, %arg12: memref<2x1x32xf32, #tpu.memory_space<vmem>>, %arg13: memref<2x1x32xf32, #tpu.memory_space<vmem>>, %arg14: memref<2x1x32xf32, #tpu.memory_space<vmem>>, %arg15: memref<2x1x32xf32, #tpu.memory_space<vmem>>, %arg16: memref<32x128xbf16, #tpu.memory_space<vmem>>, %arg17: memref<1x128xf32, #tpu.memory_space<vmem>>, %arg18: memref<1x8x128xf32, #tpu.memory_space<vmem>>) attributes {dimension_semantics = [#tpu.dimension_semantics<parallel>], iteration_bounds = array<i64: 2>, scalar_prefetch = 0 : i64, scratch_operands = 0 : i64, tpu.core_type = #tpu.core_type<tc>, window_params = [{transform_indices = @transform_0, window_bounds = array<i64: 1, 8, 1>}, {pipeline_mode = #tpu.pipeline_mode<synchronous>, transform_indices = @transform_1, window_bounds = array<i64: 8, 32>}, {pipeline_mode = #tpu.pipeline_mode<synchronous>, transform_indices = @transform_2, window_bounds = array<i64: 16, 32>}, {pipeline_mode = #tpu.pipeline_mode<synchronous>, transform_indices = @transform_3, window_bounds = array<i64: 2, 32, 96>}, {pipeline_mode = #tpu.pipeline_mode<synchronous>, transform_indices = @transform_4, window_bounds = array<i64: 2, 1, 96>}, {pipeline_mode = #tpu.pipeline_mode<synchronous>, transform_indices = @transform_5, window_bounds = array<i64: 2, 32, 32>}, {pipeline_mode = #tpu.pipeline_mode<synchronous>, transform_indices = @transform_6, window_bounds = array<i64: 2, 1, 32>}, {pipeline_mode = #tpu.pipeline_mode<synchronous>, transform_indices = @transform_7, window_bounds = array<i64: 2, 32, 128>}, {pipeline_mode = #tpu.pipeline_mode<synchronous>, transform_indices = @transform_8, window_bounds = array<i64: 2, 1, 128>}, {pipeline_mode = #tpu.pipeline_mode<synchronous>, transform_indices = @transform_9, window_bounds = array<i64: 2, 128, 32>}, {pipeline_mode = #tpu.pipeline_mode<synchronous>, transform_indices = @transform_10, window_bounds = array<i64: 2, 1, 32>}, {pipeline_mode = #tpu.pipeline_mode<synchronous>, transform_indices = @transform_11, window_bounds = array<i64: 2, 1, 32>}, {pipeline_mode = #tpu.pipeline_mode<synchronous>, transform_indices = @transform_12, window_bounds = array<i64: 2, 1, 32>}, {pipeline_mode = #tpu.pipeline_mode<synchronous>, transform_indices = @transform_13, window_bounds = array<i64: 2, 1, 32>}, {pipeline_mode = #tpu.pipeline_mode<synchronous>, transform_indices = @transform_14, window_bounds = array<i64: 2, 1, 32>}, {pipeline_mode = #tpu.pipeline_mode<synchronous>, transform_indices = @transform_15, window_bounds = array<i64: 32, 128>}, {pipeline_mode = #tpu.pipeline_mode<synchronous>, transform_indices = @transform_16, window_bounds = array<i64: 1, 128>}, {transform_indices = @transform_17, window_bounds = array<i64: 1, 8, 128>}]} {
    %c0 = arith.constant 0 : index
    %c0_0 = arith.constant 0 : index
    %c0_1 = arith.constant 0 : index
    %0 = vector.load %arg1[%c0, %c0_0, %c0_1] : memref<1x8x1xi32, #tpu.memory_space<vmem>>, vector<1x8x1xi32>
    %1 = vector.shape_cast %0 : vector<1x8x1xi32> to vector<8x1xi32>
    %2 = tpu.iota {dimensions = array<i32: 1>} : vector<8x16xi32>
    %3 = vector.broadcast %1 : vector<8x1xi32> to vector<8x16xi32>
    %4 = arith.cmpi eq, %2, %3 : vector<8x16xi32>
    %5 = arith.extui %4 : vector<8x16xi1> to vector<8x16xi32>
    %6 = arith.sitofp %5 : vector<8x16xi32> to vector<8x16xf32>
    %7 = arith.truncf %6 : vector<8x16xf32> to vector<8x16xbf16>
    %c0_2 = arith.constant 0 : index
    %c0_3 = arith.constant 0 : index
    %8 = vector.load %arg3[%c0_2, %c0_3] : memref<16x32xbf16, #tpu.memory_space<vmem>>, vector<16x32xbf16>
    %cst = arith.constant dense<0.000000e+00> : vector<8x32xf32>
    %9 = tpu.matmul %7, %8, %cst {dimension_numbers = #tpu.dot_dimension_numbers<[1], [0], [0], [1], [0, 0, 1, 1], [], []>} : vector<8x16xbf16>, vector<16x32xbf16>, vector<8x32xf32> -> vector<8x32xf32>
    %c0_4 = arith.constant 0 : index
    %c0_5 = arith.constant 0 : index
    %10 = vector.load %arg2[%c0_4, %c0_5] : memref<8x32xf32, #tpu.memory_space<vmem>>, vector<8x32xf32>
    %11 = arith.addf %9, %10 : vector<8x32xf32>
    %12 = arith.truncf %11 : vector<8x32xf32> to vector<8x32xbf16>
    %c0_6 = arith.constant 0 : index
    %c0_7 = arith.constant 0 : index
    %c0_8 = arith.constant 0 : index
    %13 = vector.load %arg4[%c0_6, %c0_7, %c0_8] : memref<2x32x96xbf16, #tpu.memory_space<vmem>>, vector<1x32x96xbf16>
    %14 = vector.shape_cast %13 : vector<1x32x96xbf16> to vector<32x96xbf16>
    %cst_9 = arith.constant dense<0.000000e+00> : vector<8x96xf32>
    %15 = tpu.matmul %12, %14, %cst_9 {dimension_numbers = #tpu.dot_dimension_numbers<[1], [0], [0], [1], [0, 0, 1, 1], [], []>} : vector<8x32xbf16>, vector<32x96xbf16>, vector<8x96xf32> -> vector<8x96xf32>
    %c0_10 = arith.constant 0 : index
    %c0_11 = arith.constant 0 : index
    %c0_12 = arith.constant 0 : index
    %16 = vector.load %arg5[%c0_10, %c0_11, %c0_12] : memref<2x1x96xf32, #tpu.memory_space<vmem>>, vector<1x1x96xf32>
    %17 = vector.shape_cast %16 : vector<1x1x96xf32> to vector<1x96xf32>
    %18 = vector.broadcast %17 : vector<1x96xf32> to vector<8x96xf32>
    %19 = arith.addf %15, %18 : vector<8x96xf32>
    %c0_13 = arith.constant 0 : index
    %c0_14 = arith.constant 0 : index
    %c0_15 = arith.constant 0 : index
    %20 = vector.load %arg6[%c0_13, %c0_14, %c0_15] : memref<2x32x32xbf16, #tpu.memory_space<vmem>>, vector<1x32x32xbf16>
    %21 = vector.shape_cast %20 : vector<1x32x32xbf16> to vector<32x32xbf16>
    %22 = vector.extract_strided_slice %19 {offsets = [0, 0], sizes = [8, 16], strides = [1, 1]} : vector<8x96xf32> to vector<8x16xf32>
    %23 = arith.truncf %22 : vector<8x16xf32> to vector<8x16xbf16>
    %24 = vector.extract_strided_slice %19 {offsets = [0, 32], sizes = [8, 16], strides = [1, 1]} : vector<8x96xf32> to vector<8x16xf32>
    %25 = arith.truncf %24 : vector<8x16xf32> to vector<8x16xbf16>
    %26 = vector.extract_strided_slice %19 {offsets = [0, 64], sizes = [8, 16], strides = [1, 1]} : vector<8x96xf32> to vector<8x16xf32>
    %27 = arith.truncf %26 : vector<8x16xf32> to vector<8x16xbf16>
    %cst_16 = arith.constant dense<0.000000e+00> : vector<8x8xf32>
    %28 = tpu.matmul %23, %25, %cst_16 {dimension_numbers = #tpu.dot_dimension_numbers<[1], [1], [0], [0], [0, 0, 1, 0], [], []>} : vector<8x16xbf16>, vector<8x16xbf16>, vector<8x8xf32> -> vector<8x8xf32>
    %cst_17 = arith.constant dense<0xFF800000> : vector<8xf32>
    %29 = vector.multi_reduction <maximumf>, %28, %cst_17 [1] : vector<8x8xf32> to vector<8xf32>
    %30 = vector.shape_cast %29 : vector<8xf32> to vector<8x1xf32>
    %31 = vector.broadcast %30 : vector<8x1xf32> to vector<8x8xf32>
    %32 = arith.subf %28, %31 : vector<8x8xf32>
    %33 = math.exp %32 : vector<8x8xf32>
    %cst_18 = arith.constant dense<0.000000e+00> : vector<8xf32>
    %34 = vector.multi_reduction <add>, %33, %cst_18 [1] : vector<8x8xf32> to vector<8xf32>
    %35 = vector.shape_cast %34 : vector<8xf32> to vector<8x1xf32>
    %36 = vector.broadcast %35 : vector<8x1xf32> to vector<8x8xf32>
    %37 = arith.divf %33, %36 : vector<8x8xf32>
    %38 = arith.truncf %37 : vector<8x8xf32> to vector<8x8xbf16>
    %cst_19 = arith.constant dense<0.000000e+00> : vector<8x16xf32>
    %39 = tpu.matmul %38, %27, %cst_19 {dimension_numbers = #tpu.dot_dimension_numbers<[1], [0], [0], [1], [0, 0, 1, 1], [], []>} : vector<8x8xbf16>, vector<8x16xbf16>, vector<8x16xf32> -> vector<8x16xf32>
    %40 = arith.truncf %39 : vector<8x16xf32> to vector<8x16xbf16>
    %41 = vector.extract_strided_slice %21 {offsets = [0, 0], sizes = [16, 32], strides = [1, 1]} : vector<32x32xbf16> to vector<16x32xbf16>
    %cst_20 = arith.constant dense<0.000000e+00> : vector<8x32xf32>
    %42 = tpu.matmul %40, %41, %cst_20 {dimension_numbers = #tpu.dot_dimension_numbers<[1], [0], [0], [1], [0, 0, 1, 1], [], []>} : vector<8x16xbf16>, vector<16x32xbf16>, vector<8x32xf32> -> vector<8x32xf32>
    %43 = vector.extract_strided_slice %19 {offsets = [0, 16], sizes = [8, 16], strides = [1, 1]} : vector<8x96xf32> to vector<8x16xf32>
    %44 = arith.truncf %43 : vector<8x16xf32> to vector<8x16xbf16>
    %45 = vector.extract_strided_slice %19 {offsets = [0, 48], sizes = [8, 16], strides = [1, 1]} : vector<8x96xf32> to vector<8x16xf32>
    %46 = arith.truncf %45 : vector<8x16xf32> to vector<8x16xbf16>
    %47 = vector.extract_strided_slice %19 {offsets = [0, 80], sizes = [8, 16], strides = [1, 1]} : vector<8x96xf32> to vector<8x16xf32>
    %48 = arith.truncf %47 : vector<8x16xf32> to vector<8x16xbf16>
    %cst_21 = arith.constant dense<0.000000e+00> : vector<8x8xf32>
    %49 = tpu.matmul %44, %46, %cst_21 {dimension_numbers = #tpu.dot_dimension_numbers<[1], [1], [0], [0], [0, 0, 1, 0], [], []>} : vector<8x16xbf16>, vector<8x16xbf16>, vector<8x8xf32> -> vector<8x8xf32>
    %cst_22 = arith.constant dense<0xFF800000> : vector<8xf32>
    %50 = vector.multi_reduction <maximumf>, %49, %cst_22 [1] : vector<8x8xf32> to vector<8xf32>
    %51 = vector.shape_cast %50 : vector<8xf32> to vector<8x1xf32>
    %52 = vector.broadcast %51 : vector<8x1xf32> to vector<8x8xf32>
    %53 = arith.subf %49, %52 : vector<8x8xf32>
    %54 = math.exp %53 : vector<8x8xf32>
    %cst_23 = arith.constant dense<0.000000e+00> : vector<8xf32>
    %55 = vector.multi_reduction <add>, %54, %cst_23 [1] : vector<8x8xf32> to vector<8xf32>
    %56 = vector.shape_cast %55 : vector<8xf32> to vector<8x1xf32>
    %57 = vector.broadcast %56 : vector<8x1xf32> to vector<8x8xf32>
    %58 = arith.divf %54, %57 : vector<8x8xf32>
    %59 = arith.truncf %58 : vector<8x8xf32> to vector<8x8xbf16>
    %cst_24 = arith.constant dense<0.000000e+00> : vector<8x16xf32>
    %60 = tpu.matmul %59, %48, %cst_24 {dimension_numbers = #tpu.dot_dimension_numbers<[1], [0], [0], [1], [0, 0, 1, 1], [], []>} : vector<8x8xbf16>, vector<8x16xbf16>, vector<8x16xf32> -> vector<8x16xf32>
    %61 = arith.truncf %60 : vector<8x16xf32> to vector<8x16xbf16>
    %62 = vector.extract_strided_slice %21 {offsets = [16, 0], sizes = [16, 32], strides = [1, 1]} : vector<32x32xbf16> to vector<16x32xbf16>
    %cst_25 = arith.constant dense<0.000000e+00> : vector<8x32xf32>
    %63 = tpu.matmul %61, %62, %cst_25 {dimension_numbers = #tpu.dot_dimension_numbers<[1], [0], [0], [1], [0, 0, 1, 1], [], []>} : vector<8x16xbf16>, vector<16x32xbf16>, vector<8x32xf32> -> vector<8x32xf32>
    %64 = arith.addf %42, %63 : vector<8x32xf32>
    %c0_26 = arith.constant 0 : index
    %c0_27 = arith.constant 0 : index
    %c0_28 = arith.constant 0 : index
    %65 = vector.load %arg7[%c0_26, %c0_27, %c0_28] : memref<2x1x32xf32, #tpu.memory_space<vmem>>, vector<1x1x32xf32>
    %66 = vector.shape_cast %65 : vector<1x1x32xf32> to vector<1x32xf32>
    %67 = vector.broadcast %66 : vector<1x32xf32> to vector<8x32xf32>
    %68 = arith.addf %64, %67 : vector<8x32xf32>
    %69 = arith.addf %11, %68 : vector<8x32xf32>
    %c0_29 = arith.constant 0 : index
    %c0_30 = arith.constant 0 : index
    %c0_31 = arith.constant 0 : index
    %70 = vector.load %arg12[%c0_29, %c0_30, %c0_31] : memref<2x1x32xf32, #tpu.memory_space<vmem>>, vector<1x1x32xf32>
    %71 = vector.shape_cast %70 : vector<1x1x32xf32> to vector<1x32xf32>
    %c0_32 = arith.constant 0 : index
    %c0_33 = arith.constant 0 : index
    %c0_34 = arith.constant 0 : index
    %72 = vector.load %arg13[%c0_32, %c0_33, %c0_34] : memref<2x1x32xf32, #tpu.memory_space<vmem>>, vector<1x1x32xf32>
    %73 = vector.shape_cast %72 : vector<1x1x32xf32> to vector<1x32xf32>
    %cst_35 = arith.constant dense<0.000000e+00> : vector<8xf32>
    %74 = vector.multi_reduction <add>, %69, %cst_35 [1] : vector<8x32xf32> to vector<8xf32>
    %75 = vector.shape_cast %74 : vector<8xf32> to vector<8x1xf32>
    %cst_36 = arith.constant 3.200000e+01 : f32
    %76 = vector.broadcast %cst_36 : f32 to vector<8x1xf32>
    %77 = arith.divf %75, %76 : vector<8x1xf32>
    %78 = vector.broadcast %77 : vector<8x1xf32> to vector<8x32xf32>
    %79 = arith.subf %69, %78 : vector<8x32xf32>
    %80 = arith.mulf %79, %79 : vector<8x32xf32>
    %cst_37 = arith.constant dense<0.000000e+00> : vector<8xf32>
    %81 = vector.multi_reduction <add>, %80, %cst_37 [1] : vector<8x32xf32> to vector<8xf32>
    %82 = vector.shape_cast %81 : vector<8xf32> to vector<8x1xf32>
    %cst_38 = arith.constant 3.200000e+01 : f32
    %83 = vector.broadcast %cst_38 : f32 to vector<8x1xf32>
    %84 = arith.divf %82, %83 : vector<8x1xf32>
    %85 = vector.broadcast %77 : vector<8x1xf32> to vector<8x32xf32>
    %86 = arith.subf %69, %85 : vector<8x32xf32>
    %cst_39 = arith.constant 9.99999974E-6 : f32
    %87 = vector.broadcast %cst_39 : f32 to vector<8x1xf32>
    %88 = arith.addf %84, %87 : vector<8x1xf32>
    %89 = math.rsqrt %88 : vector<8x1xf32>
    %90 = vector.broadcast %89 : vector<8x1xf32> to vector<8x32xf32>
    %91 = arith.mulf %86, %90 : vector<8x32xf32>
    %92 = vector.broadcast %71 : vector<1x32xf32> to vector<8x32xf32>
    %93 = arith.mulf %91, %92 : vector<8x32xf32>
    %94 = vector.broadcast %73 : vector<1x32xf32> to vector<8x32xf32>
    %95 = arith.addf %93, %94 : vector<8x32xf32>
    %96 = arith.truncf %95 : vector<8x32xf32> to vector<8x32xbf16>
    %c0_40 = arith.constant 0 : index
    %c0_41 = arith.constant 0 : index
    %c0_42 = arith.constant 0 : index
    %97 = vector.load %arg8[%c0_40, %c0_41, %c0_42] : memref<2x32x128xbf16, #tpu.memory_space<vmem>>, vector<1x32x128xbf16>
    %98 = vector.shape_cast %97 : vector<1x32x128xbf16> to vector<32x128xbf16>
    %cst_43 = arith.constant dense<0.000000e+00> : vector<8x128xf32>
    %99 = tpu.matmul %96, %98, %cst_43 {dimension_numbers = #tpu.dot_dimension_numbers<[1], [0], [0], [1], [0, 0, 1, 1], [], []>} : vector<8x32xbf16>, vector<32x128xbf16>, vector<8x128xf32> -> vector<8x128xf32>
    %c0_44 = arith.constant 0 : index
    %c0_45 = arith.constant 0 : index
    %c0_46 = arith.constant 0 : index
    %100 = vector.load %arg9[%c0_44, %c0_45, %c0_46] : memref<2x1x128xf32, #tpu.memory_space<vmem>>, vector<1x1x128xf32>
    %101 = vector.shape_cast %100 : vector<1x1x128xf32> to vector<1x128xf32>
    %102 = vector.broadcast %101 : vector<1x128xf32> to vector<8x128xf32>
    %103 = arith.addf %99, %102 : vector<8x128xf32>
    %cst_47 = arith.constant 0.000000e+00 : f32
    %104 = vector.broadcast %cst_47 : f32 to vector<8x128xf32>
    %105 = arith.maximumf %103, %104 : vector<8x128xf32>
    %106 = arith.truncf %105 : vector<8x128xf32> to vector<8x128xbf16>
    %c0_48 = arith.constant 0 : index
    %c0_49 = arith.constant 0 : index
    %c0_50 = arith.constant 0 : index
    %107 = vector.load %arg10[%c0_48, %c0_49, %c0_50] : memref<2x128x32xbf16, #tpu.memory_space<vmem>>, vector<1x128x32xbf16>
    %108 = vector.shape_cast %107 : vector<1x128x32xbf16> to vector<128x32xbf16>
    %cst_51 = arith.constant dense<0.000000e+00> : vector<8x32xf32>
    %109 = tpu.matmul %106, %108, %cst_51 {dimension_numbers = #tpu.dot_dimension_numbers<[1], [0], [0], [1], [0, 0, 1, 1], [], []>} : vector<8x128xbf16>, vector<128x32xbf16>, vector<8x32xf32> -> vector<8x32xf32>
    %c0_52 = arith.constant 0 : index
    %c0_53 = arith.constant 0 : index
    %c0_54 = arith.constant 0 : index
    %110 = vector.load %arg11[%c0_52, %c0_53, %c0_54] : memref<2x1x32xf32, #tpu.memory_space<vmem>>, vector<1x1x32xf32>
    %111 = vector.shape_cast %110 : vector<1x1x32xf32> to vector<1x32xf32>
    %112 = vector.broadcast %111 : vector<1x32xf32> to vector<8x32xf32>
    %113 = arith.addf %109, %112 : vector<8x32xf32>
    %114 = arith.addf %95, %113 : vector<8x32xf32>
    %c0_55 = arith.constant 0 : index
    %c0_56 = arith.constant 0 : index
    %c0_57 = arith.constant 0 : index
    %115 = vector.load %arg14[%c0_55, %c0_56, %c0_57] : memref<2x1x32xf32, #tpu.memory_space<vmem>>, vector<1x1x32xf32>
    %116 = vector.shape_cast %115 : vector<1x1x32xf32> to vector<1x32xf32>
    %c0_58 = arith.constant 0 : index
    %c0_59 = arith.constant 0 : index
    %c0_60 = arith.constant 0 : index
    %117 = vector.load %arg15[%c0_58, %c0_59, %c0_60] : memref<2x1x32xf32, #tpu.memory_space<vmem>>, vector<1x1x32xf32>
    %118 = vector.shape_cast %117 : vector<1x1x32xf32> to vector<1x32xf32>
    %cst_61 = arith.constant dense<0.000000e+00> : vector<8xf32>
    %119 = vector.multi_reduction <add>, %114, %cst_61 [1] : vector<8x32xf32> to vector<8xf32>
    %120 = vector.shape_cast %119 : vector<8xf32> to vector<8x1xf32>
    %cst_62 = arith.constant 3.200000e+01 : f32
    %121 = vector.broadcast %cst_62 : f32 to vector<8x1xf32>
    %122 = arith.divf %120, %121 : vector<8x1xf32>
    %123 = vector.broadcast %122 : vector<8x1xf32> to vector<8x32xf32>
    %124 = arith.subf %114, %123 : vector<8x32xf32>
    %125 = arith.mulf %124, %124 : vector<8x32xf32>
    %cst_63 = arith.constant dense<0.000000e+00> : vector<8xf32>
    %126 = vector.multi_reduction <add>, %125, %cst_63 [1] : vector<8x32xf32> to vector<8xf32>
    %127 = vector.shape_cast %126 : vector<8xf32> to vector<8x1xf32>
    %cst_64 = arith.constant 3.200000e+01 : f32
    %128 = vector.broadcast %cst_64 : f32 to vector<8x1xf32>
    %129 = arith.divf %127, %128 : vector<8x1xf32>
    %130 = vector.broadcast %122 : vector<8x1xf32> to vector<8x32xf32>
    %131 = arith.subf %114, %130 : vector<8x32xf32>
    %cst_65 = arith.constant 9.99999974E-6 : f32
    %132 = vector.broadcast %cst_65 : f32 to vector<8x1xf32>
    %133 = arith.addf %129, %132 : vector<8x1xf32>
    %134 = math.rsqrt %133 : vector<8x1xf32>
    %135 = vector.broadcast %134 : vector<8x1xf32> to vector<8x32xf32>
    %136 = arith.mulf %131, %135 : vector<8x32xf32>
    %137 = vector.broadcast %116 : vector<1x32xf32> to vector<8x32xf32>
    %138 = arith.mulf %136, %137 : vector<8x32xf32>
    %139 = vector.broadcast %118 : vector<1x32xf32> to vector<8x32xf32>
    %140 = arith.addf %138, %139 : vector<8x32xf32>
    %141 = arith.truncf %140 : vector<8x32xf32> to vector<8x32xbf16>
    %c1 = arith.constant 1 : index
    %c0_66 = arith.constant 0 : index
    %c0_67 = arith.constant 0 : index
    %142 = vector.load %arg4[%c1, %c0_66, %c0_67] : memref<2x32x96xbf16, #tpu.memory_space<vmem>>, vector<1x32x96xbf16>
    %143 = vector.shape_cast %142 : vector<1x32x96xbf16> to vector<32x96xbf16>
    %cst_68 = arith.constant dense<0.000000e+00> : vector<8x96xf32>
    %144 = tpu.matmul %141, %143, %cst_68 {dimension_numbers = #tpu.dot_dimension_numbers<[1], [0], [0], [1], [0, 0, 1, 1], [], []>} : vector<8x32xbf16>, vector<32x96xbf16>, vector<8x96xf32> -> vector<8x96xf32>
    %c1_69 = arith.constant 1 : index
    %c0_70 = arith.constant 0 : index
    %c0_71 = arith.constant 0 : index
    %145 = vector.load %arg5[%c1_69, %c0_70, %c0_71] : memref<2x1x96xf32, #tpu.memory_space<vmem>>, vector<1x1x96xf32>
    %146 = vector.shape_cast %145 : vector<1x1x96xf32> to vector<1x96xf32>
    %147 = vector.broadcast %146 : vector<1x96xf32> to vector<8x96xf32>
    %148 = arith.addf %144, %147 : vector<8x96xf32>
    %c1_72 = arith.constant 1 : index
    %c0_73 = arith.constant 0 : index
    %c0_74 = arith.constant 0 : index
    %149 = vector.load %arg6[%c1_72, %c0_73, %c0_74] : memref<2x32x32xbf16, #tpu.memory_space<vmem>>, vector<1x32x32xbf16>
    %150 = vector.shape_cast %149 : vector<1x32x32xbf16> to vector<32x32xbf16>
    %151 = vector.extract_strided_slice %148 {offsets = [0, 0], sizes = [8, 16], strides = [1, 1]} : vector<8x96xf32> to vector<8x16xf32>
    %152 = arith.truncf %151 : vector<8x16xf32> to vector<8x16xbf16>
    %153 = vector.extract_strided_slice %148 {offsets = [0, 32], sizes = [8, 16], strides = [1, 1]} : vector<8x96xf32> to vector<8x16xf32>
    %154 = arith.truncf %153 : vector<8x16xf32> to vector<8x16xbf16>
    %155 = vector.extract_strided_slice %148 {offsets = [0, 64], sizes = [8, 16], strides = [1, 1]} : vector<8x96xf32> to vector<8x16xf32>
    %156 = arith.truncf %155 : vector<8x16xf32> to vector<8x16xbf16>
    %cst_75 = arith.constant dense<0.000000e+00> : vector<8x8xf32>
    %157 = tpu.matmul %152, %154, %cst_75 {dimension_numbers = #tpu.dot_dimension_numbers<[1], [1], [0], [0], [0, 0, 1, 0], [], []>} : vector<8x16xbf16>, vector<8x16xbf16>, vector<8x8xf32> -> vector<8x8xf32>
    %cst_76 = arith.constant dense<0xFF800000> : vector<8xf32>
    %158 = vector.multi_reduction <maximumf>, %157, %cst_76 [1] : vector<8x8xf32> to vector<8xf32>
    %159 = vector.shape_cast %158 : vector<8xf32> to vector<8x1xf32>
    %160 = vector.broadcast %159 : vector<8x1xf32> to vector<8x8xf32>
    %161 = arith.subf %157, %160 : vector<8x8xf32>
    %162 = math.exp %161 : vector<8x8xf32>
    %cst_77 = arith.constant dense<0.000000e+00> : vector<8xf32>
    %163 = vector.multi_reduction <add>, %162, %cst_77 [1] : vector<8x8xf32> to vector<8xf32>
    %164 = vector.shape_cast %163 : vector<8xf32> to vector<8x1xf32>
    %165 = vector.broadcast %164 : vector<8x1xf32> to vector<8x8xf32>
    %166 = arith.divf %162, %165 : vector<8x8xf32>
    %167 = arith.truncf %166 : vector<8x8xf32> to vector<8x8xbf16>
    %cst_78 = arith.constant dense<0.000000e+00> : vector<8x16xf32>
    %168 = tpu.matmul %167, %156, %cst_78 {dimension_numbers = #tpu.dot_dimension_numbers<[1], [0], [0], [1], [0, 0, 1, 1], [], []>} : vector<8x8xbf16>, vector<8x16xbf16>, vector<8x16xf32> -> vector<8x16xf32>
    %169 = arith.truncf %168 : vector<8x16xf32> to vector<8x16xbf16>
    %170 = vector.extract_strided_slice %150 {offsets = [0, 0], sizes = [16, 32], strides = [1, 1]} : vector<32x32xbf16> to vector<16x32xbf16>
    %cst_79 = arith.constant dense<0.000000e+00> : vector<8x32xf32>
    %171 = tpu.matmul %169, %170, %cst_79 {dimension_numbers = #tpu.dot_dimension_numbers<[1], [0], [0], [1], [0, 0, 1, 1], [], []>} : vector<8x16xbf16>, vector<16x32xbf16>, vector<8x32xf32> -> vector<8x32xf32>
    %172 = vector.extract_strided_slice %148 {offsets = [0, 16], sizes = [8, 16], strides = [1, 1]} : vector<8x96xf32> to vector<8x16xf32>
    %173 = arith.truncf %172 : vector<8x16xf32> to vector<8x16xbf16>
    %174 = vector.extract_strided_slice %148 {offsets = [0, 48], sizes = [8, 16], strides = [1, 1]} : vector<8x96xf32> to vector<8x16xf32>
    %175 = arith.truncf %174 : vector<8x16xf32> to vector<8x16xbf16>
    %176 = vector.extract_strided_slice %148 {offsets = [0, 80], sizes = [8, 16], strides = [1, 1]} : vector<8x96xf32> to vector<8x16xf32>
    %177 = arith.truncf %176 : vector<8x16xf32> to vector<8x16xbf16>
    %cst_80 = arith.constant dense<0.000000e+00> : vector<8x8xf32>
    %178 = tpu.matmul %173, %175, %cst_80 {dimension_numbers = #tpu.dot_dimension_numbers<[1], [1], [0], [0], [0, 0, 1, 0], [], []>} : vector<8x16xbf16>, vector<8x16xbf16>, vector<8x8xf32> -> vector<8x8xf32>
    %cst_81 = arith.constant dense<0xFF800000> : vector<8xf32>
    %179 = vector.multi_reduction <maximumf>, %178, %cst_81 [1] : vector<8x8xf32> to vector<8xf32>
    %180 = vector.shape_cast %179 : vector<8xf32> to vector<8x1xf32>
    %181 = vector.broadcast %180 : vector<8x1xf32> to vector<8x8xf32>
    %182 = arith.subf %178, %181 : vector<8x8xf32>
    %183 = math.exp %182 : vector<8x8xf32>
    %cst_82 = arith.constant dense<0.000000e+00> : vector<8xf32>
    %184 = vector.multi_reduction <add>, %183, %cst_82 [1] : vector<8x8xf32> to vector<8xf32>
    %185 = vector.shape_cast %184 : vector<8xf32> to vector<8x1xf32>
    %186 = vector.broadcast %185 : vector<8x1xf32> to vector<8x8xf32>
    %187 = arith.divf %183, %186 : vector<8x8xf32>
    %188 = arith.truncf %187 : vector<8x8xf32> to vector<8x8xbf16>
    %cst_83 = arith.constant dense<0.000000e+00> : vector<8x16xf32>
    %189 = tpu.matmul %188, %177, %cst_83 {dimension_numbers = #tpu.dot_dimension_numbers<[1], [0], [0], [1], [0, 0, 1, 1], [], []>} : vector<8x8xbf16>, vector<8x16xbf16>, vector<8x16xf32> -> vector<8x16xf32>
    %190 = arith.truncf %189 : vector<8x16xf32> to vector<8x16xbf16>
    %191 = vector.extract_strided_slice %150 {offsets = [16, 0], sizes = [16, 32], strides = [1, 1]} : vector<32x32xbf16> to vector<16x32xbf16>
    %cst_84 = arith.constant dense<0.000000e+00> : vector<8x32xf32>
    %192 = tpu.matmul %190, %191, %cst_84 {dimension_numbers = #tpu.dot_dimension_numbers<[1], [0], [0], [1], [0, 0, 1, 1], [], []>} : vector<8x16xbf16>, vector<16x32xbf16>, vector<8x32xf32> -> vector<8x32xf32>
    %193 = arith.addf %171, %192 : vector<8x32xf32>
    %c1_85 = arith.constant 1 : index
    %c0_86 = arith.constant 0 : index
    %c0_87 = arith.constant 0 : index
    %194 = vector.load %arg7[%c1_85, %c0_86, %c0_87] : memref<2x1x32xf32, #tpu.memory_space<vmem>>, vector<1x1x32xf32>
    %195 = vector.shape_cast %194 : vector<1x1x32xf32> to vector<1x32xf32>
    %196 = vector.broadcast %195 : vector<1x32xf32> to vector<8x32xf32>
    %197 = arith.addf %193, %196 : vector<8x32xf32>
    %198 = arith.addf %140, %197 : vector<8x32xf32>
    %c1_88 = arith.constant 1 : index
    %c0_89 = arith.constant 0 : index
    %c0_90 = arith.constant 0 : index
    %199 = vector.load %arg12[%c1_88, %c0_89, %c0_90] : memref<2x1x32xf32, #tpu.memory_space<vmem>>, vector<1x1x32xf32>
    %200 = vector.shape_cast %199 : vector<1x1x32xf32> to vector<1x32xf32>
    %c1_91 = arith.constant 1 : index
    %c0_92 = arith.constant 0 : index
    %c0_93 = arith.constant 0 : index
    %201 = vector.load %arg13[%c1_91, %c0_92, %c0_93] : memref<2x1x32xf32, #tpu.memory_space<vmem>>, vector<1x1x32xf32>
    %202 = vector.shape_cast %201 : vector<1x1x32xf32> to vector<1x32xf32>
    %cst_94 = arith.constant dense<0.000000e+00> : vector<8xf32>
    %203 = vector.multi_reduction <add>, %198, %cst_94 [1] : vector<8x32xf32> to vector<8xf32>
    %204 = vector.shape_cast %203 : vector<8xf32> to vector<8x1xf32>
    %cst_95 = arith.constant 3.200000e+01 : f32
    %205 = vector.broadcast %cst_95 : f32 to vector<8x1xf32>
    %206 = arith.divf %204, %205 : vector<8x1xf32>
    %207 = vector.broadcast %206 : vector<8x1xf32> to vector<8x32xf32>
    %208 = arith.subf %198, %207 : vector<8x32xf32>
    %209 = arith.mulf %208, %208 : vector<8x32xf32>
    %cst_96 = arith.constant dense<0.000000e+00> : vector<8xf32>
    %210 = vector.multi_reduction <add>, %209, %cst_96 [1] : vector<8x32xf32> to vector<8xf32>
    %211 = vector.shape_cast %210 : vector<8xf32> to vector<8x1xf32>
    %cst_97 = arith.constant 3.200000e+01 : f32
    %212 = vector.broadcast %cst_97 : f32 to vector<8x1xf32>
    %213 = arith.divf %211, %212 : vector<8x1xf32>
    %214 = vector.broadcast %206 : vector<8x1xf32> to vector<8x32xf32>
    %215 = arith.subf %198, %214 : vector<8x32xf32>
    %cst_98 = arith.constant 9.99999974E-6 : f32
    %216 = vector.broadcast %cst_98 : f32 to vector<8x1xf32>
    %217 = arith.addf %213, %216 : vector<8x1xf32>
    %218 = math.rsqrt %217 : vector<8x1xf32>
    %219 = vector.broadcast %218 : vector<8x1xf32> to vector<8x32xf32>
    %220 = arith.mulf %215, %219 : vector<8x32xf32>
    %221 = vector.broadcast %200 : vector<1x32xf32> to vector<8x32xf32>
    %222 = arith.mulf %220, %221 : vector<8x32xf32>
    %223 = vector.broadcast %202 : vector<1x32xf32> to vector<8x32xf32>
    %224 = arith.addf %222, %223 : vector<8x32xf32>
    %225 = arith.truncf %224 : vector<8x32xf32> to vector<8x32xbf16>
    %c1_99 = arith.constant 1 : index
    %c0_100 = arith.constant 0 : index
    %c0_101 = arith.constant 0 : index
    %226 = vector.load %arg8[%c1_99, %c0_100, %c0_101] : memref<2x32x128xbf16, #tpu.memory_space<vmem>>, vector<1x32x128xbf16>
    %227 = vector.shape_cast %226 : vector<1x32x128xbf16> to vector<32x128xbf16>
    %cst_102 = arith.constant dense<0.000000e+00> : vector<8x128xf32>
    %228 = tpu.matmul %225, %227, %cst_102 {dimension_numbers = #tpu.dot_dimension_numbers<[1], [0], [0], [1], [0, 0, 1, 1], [], []>} : vector<8x32xbf16>, vector<32x128xbf16>, vector<8x128xf32> -> vector<8x128xf32>
    %c1_103 = arith.constant 1 : index
    %c0_104 = arith.constant 0 : index
    %c0_105 = arith.constant 0 : index
    %229 = vector.load %arg9[%c1_103, %c0_104, %c0_105] : memref<2x1x128xf32, #tpu.memory_space<vmem>>, vector<1x1x128xf32>
    %230 = vector.shape_cast %229 : vector<1x1x128xf32> to vector<1x128xf32>
    %231 = vector.broadcast %230 : vector<1x128xf32> to vector<8x128xf32>
    %232 = arith.addf %228, %231 : vector<8x128xf32>
    %cst_106 = arith.constant 0.000000e+00 : f32
    %233 = vector.broadcast %cst_106 : f32 to vector<8x128xf32>
    %234 = arith.maximumf %232, %233 : vector<8x128xf32>
    %235 = arith.truncf %234 : vector<8x128xf32> to vector<8x128xbf16>
    %c1_107 = arith.constant 1 : index
    %c0_108 = arith.constant 0 : index
    %c0_109 = arith.constant 0 : index
    %236 = vector.load %arg10[%c1_107, %c0_108, %c0_109] : memref<2x128x32xbf16, #tpu.memory_space<vmem>>, vector<1x128x32xbf16>
    %237 = vector.shape_cast %236 : vector<1x128x32xbf16> to vector<128x32xbf16>
    %cst_110 = arith.constant dense<0.000000e+00> : vector<8x32xf32>
    %238 = tpu.matmul %235, %237, %cst_110 {dimension_numbers = #tpu.dot_dimension_numbers<[1], [0], [0], [1], [0, 0, 1, 1], [], []>} : vector<8x128xbf16>, vector<128x32xbf16>, vector<8x32xf32> -> vector<8x32xf32>
    %c1_111 = arith.constant 1 : index
    %c0_112 = arith.constant 0 : index
    %c0_113 = arith.constant 0 : index
    %239 = vector.load %arg11[%c1_111, %c0_112, %c0_113] : memref<2x1x32xf32, #tpu.memory_space<vmem>>, vector<1x1x32xf32>
    %240 = vector.shape_cast %239 : vector<1x1x32xf32> to vector<1x32xf32>
    %241 = vector.broadcast %240 : vector<1x32xf32> to vector<8x32xf32>
    %242 = arith.addf %238, %241 : vector<8x32xf32>
    %243 = arith.addf %224, %242 : vector<8x32xf32>
    %c1_114 = arith.constant 1 : index
    %c0_115 = arith.constant 0 : index
    %c0_116 = arith.constant 0 : index
    %244 = vector.load %arg14[%c1_114, %c0_115, %c0_116] : memref<2x1x32xf32, #tpu.memory_space<vmem>>, vector<1x1x32xf32>
    %245 = vector.shape_cast %244 : vector<1x1x32xf32> to vector<1x32xf32>
    %c1_117 = arith.constant 1 : index
    %c0_118 = arith.constant 0 : index
    %c0_119 = arith.constant 0 : index
    %246 = vector.load %arg15[%c1_117, %c0_118, %c0_119] : memref<2x1x32xf32, #tpu.memory_space<vmem>>, vector<1x1x32xf32>
    %247 = vector.shape_cast %246 : vector<1x1x32xf32> to vector<1x32xf32>
    %cst_120 = arith.constant dense<0.000000e+00> : vector<8xf32>
    %248 = vector.multi_reduction <add>, %243, %cst_120 [1] : vector<8x32xf32> to vector<8xf32>
    %249 = vector.shape_cast %248 : vector<8xf32> to vector<8x1xf32>
    %cst_121 = arith.constant 3.200000e+01 : f32
    %250 = vector.broadcast %cst_121 : f32 to vector<8x1xf32>
    %251 = arith.divf %249, %250 : vector<8x1xf32>
    %252 = vector.broadcast %251 : vector<8x1xf32> to vector<8x32xf32>
    %253 = arith.subf %243, %252 : vector<8x32xf32>
    %254 = arith.mulf %253, %253 : vector<8x32xf32>
    %cst_122 = arith.constant dense<0.000000e+00> : vector<8xf32>
    %255 = vector.multi_reduction <add>, %254, %cst_122 [1] : vector<8x32xf32> to vector<8xf32>
    %256 = vector.shape_cast %255 : vector<8xf32> to vector<8x1xf32>
    %cst_123 = arith.constant 3.200000e+01 : f32
    %257 = vector.broadcast %cst_123 : f32 to vector<8x1xf32>
    %258 = arith.divf %256, %257 : vector<8x1xf32>
    %259 = vector.broadcast %251 : vector<8x1xf32> to vector<8x32xf32>
    %260 = arith.subf %243, %259 : vector<8x32xf32>
    %cst_124 = arith.constant 9.99999974E-6 : f32
    %261 = vector.broadcast %cst_124 : f32 to vector<8x1xf32>
    %262 = arith.addf %258, %261 : vector<8x1xf32>
    %263 = math.rsqrt %262 : vector<8x1xf32>
    %264 = vector.broadcast %263 : vector<8x1xf32> to vector<8x32xf32>
    %265 = arith.mulf %260, %264 : vector<8x32xf32>
    %266 = vector.broadcast %245 : vector<1x32xf32> to vector<8x32xf32>
    %267 = arith.mulf %265, %266 : vector<8x32xf32>
    %268 = vector.broadcast %247 : vector<1x32xf32> to vector<8x32xf32>
    %269 = arith.addf %267, %268 : vector<8x32xf32>
    %270 = arith.truncf %269 : vector<8x32xf32> to vector<8x32xbf16>
    %c0_125 = arith.constant 0 : index
    %c0_126 = arith.constant 0 : index
    %271 = vector.load %arg16[%c0_125, %c0_126] : memref<32x128xbf16, #tpu.memory_space<vmem>>, vector<32x128xbf16>
    %cst_127 = arith.constant dense<0.000000e+00> : vector<8x128xf32>
    %272 = tpu.matmul %270, %271, %cst_127 {dimension_numbers = #tpu.dot_dimension_numbers<[1], [0], [0], [1], [0, 0, 1, 1], [], []>} : vector<8x32xbf16>, vector<32x128xbf16>, vector<8x128xf32> -> vector<8x128xf32>
    %c0_128 = arith.constant 0 : index
    %c0_129 = arith.constant 0 : index
    %273 = vector.load %arg17[%c0_128, %c0_129] : memref<1x128xf32, #tpu.memory_space<vmem>>, vector<1x128xf32>
    %274 = vector.broadcast %273 : vector<1x128xf32> to vector<8x128xf32>
    %275 = arith.addf %272, %274 : vector<8x128xf32>
    %c0_130 = arith.constant 0 : index
    %c0_131 = arith.constant 0 : index
    %c0_132 = arith.constant 0 : index
    %276 = vector.load %arg18[%c0_130, %c0_131, %c0_132] : memref<1x8x128xf32, #tpu.memory_space<vmem>>, vector<1x8x128xf32>
    %277 = vector.shape_cast %276 : vector<1x8x128xf32> to vector<8x128xf32>
    %278 = vector.shape_cast %275 : vector<8x128xf32> to vector<1x8x128xf32>
    tpu.vector_store %arg18[%c0_130, %c0_131, %c0_132], %278 {strides = array<i32>} : memref<1x8x128xf32, #tpu.memory_space<vmem>>, vector<1x8x128xf32>,
    return
  }
  func.func @transform_0(%arg0: i32) -> (i32, i32, i32) {
    %c0_i32 = arith.constant 0 : i32
    %c0_i32_0 = arith.constant 0 : i32
    %c0_i32_1 = arith.constant 0 : i32
    return %arg0, %c0_i32, %c0_i32_0 : i32, i32, i32
  }
  func.func @transform_1(%arg0: i32) -> (i32, i32) {
    %c0_i32 = arith.constant 0 : i32
    %c0_i32_0 = arith.constant 0 : i32
    %c0_i32_1 = arith.constant 0 : i32
    return %c0_i32, %c0_i32_0 : i32, i32
  }
  func.func @transform_2(%arg0: i32) -> (i32, i32) {
    %c0_i32 = arith.constant 0 : i32
    %c0_i32_0 = arith.constant 0 : i32
    %c0_i32_1 = arith.constant 0 : i32
    return %c0_i32, %c0_i32_0 : i32, i32
  }
  func.func @transform_3(%arg0: i32) -> (i32, i32, i32) {
    %c0_i32 = arith.constant 0 : i32
    %c0_i32_0 = arith.constant 0 : i32
    %c0_i32_1 = arith.constant 0 : i32
    %c0_i32_2 = arith.constant 0 : i32
    return %c0_i32, %c0_i32_0, %c0_i32_1 : i32, i32, i32
  }
  func.func @transform_4(%arg0: i32) -> (i32, i32, i32) {
    %c0_i32 = arith.constant 0 : i32
    %c0_i32_0 = arith.constant 0 : i32
    %c0_i32_1 = arith.constant 0 : i32
    %c0_i32_2 = arith.constant 0 : i32
    return %c0_i32, %c0_i32_0, %c0_i32_1 : i32, i32, i32
  }
  func.func @transform_5(%arg0: i32) -> (i32, i32, i32) {
    %c0_i32 = arith.constant 0 : i32
    %c0_i32_0 = arith.constant 0 : i32
    %c0_i32_1 = arith.constant 0 : i32
    %c0_i32_2 = arith.constant 0 : i32
    return %c0_i32, %c0_i32_0, %c0_i32_1 : i32, i32, i32
  }
  func.func @transform_6(%arg0: i32) -> (i32, i32, i32) {
    %c0_i32 = arith.constant 0 : i32
    %c0_i32_0 = arith.constant 0 : i32
    %c0_i32_1 = arith.constant 0 : i32
    %c0_i32_2 = arith.constant 0 : i32
    return %c0_i32, %c0_i32_0, %c0_i32_1 : i32, i32, i32
  }
  func.func @transform_7(%arg0: i32) -> (i32, i32, i32) {
    %c0_i32 = arith.constant 0 : i32
    %c0_i32_0 = arith.constant 0 : i32
    %c0_i32_1 = arith.constant 0 : i32
    %c0_i32_2 = arith.constant 0 : i32
    return %c0_i32, %c0_i32_0, %c0_i32_1 : i32, i32, i32
  }
  func.func @transform_8(%arg0: i32) -> (i32, i32, i32) {
    %c0_i32 = arith.constant 0 : i32
    %c0_i32_0 = arith.constant 0 : i32
    %c0_i32_1 = arith.constant 0 : i32
    %c0_i32_2 = arith.constant 0 : i32
    return %c0_i32, %c0_i32_0, %c0_i32_1 : i32, i32, i32
  }
  func.func @transform_9(%arg0: i32) -> (i32, i32, i32) {
    %c0_i32 = arith.constant 0 : i32
    %c0_i32_0 = arith.constant 0 : i32
    %c0_i32_1 = arith.constant 0 : i32
    %c0_i32_2 = arith.constant 0 : i32
    return %c0_i32, %c0_i32_0, %c0_i32_1 : i32, i32, i32
  }
  func.func @transform_10(%arg0: i32) -> (i32, i32, i32) {
    %c0_i32 = arith.constant 0 : i32
    %c0_i32_0 = arith.constant 0 : i32
    %c0_i32_1 = arith.constant 0 : i32
    %c0_i32_2 = arith.constant 0 : i32
    return %c0_i32, %c0_i32_0, %c0_i32_1 : i32, i32, i32
  }
  func.func @transform_11(%arg0: i32) -> (i32, i32, i32) {
    %c0_i32 = arith.constant 0 : i32
    %c0_i32_0 = arith.constant 0 : i32
    %c0_i32_1 = arith.constant 0 : i32
    %c0_i32_2 = arith.constant 0 : i32
    return %c0_i32, %c0_i32_0, %c0_i32_1 : i32, i32, i32
  }
  func.func @transform_12(%arg0: i32) -> (i32, i32, i32) {
    %c0_i32 = arith.constant 0 : i32
    %c0_i32_0 = arith.constant 0 : i32
    %c0_i32_1 = arith.constant 0 : i32
    %c0_i32_2 = arith.constant 0 : i32
    return %c0_i32, %c0_i32_0, %c0_i32_1 : i32, i32, i32
  }
  func.func @transform_13(%arg0: i32) -> (i32, i32, i32) {
    %c0_i32 = arith.constant 0 : i32
    %c0_i32_0 = arith.constant 0 : i32
    %c0_i32_1 = arith.constant 0 : i32
    %c0_i32_2 = arith.constant 0 : i32
    return %c0_i32, %c0_i32_0, %c0_i32_1 : i32, i32, i32
  }
  func.func @transform_14(%arg0: i32) -> (i32, i32, i32) {
    %c0_i32 = arith.constant 0 : i32
    %c0_i32_0 = arith.constant 0 : i32
    %c0_i32_1 = arith.constant 0 : i32
    %c0_i32_2 = arith.constant 0 : i32
    return %c0_i32, %c0_i32_0, %c0_i32_1 : i32, i32, i32
  }
  func.func @transform_15(%arg0: i32) -> (i32, i32) {
    %c0_i32 = arith.constant 0 : i32
    %c0_i32_0 = arith.constant 0 : i32
    %c0_i32_1 = arith.constant 0 : i32
    return %c0_i32, %c0_i32_0 : i32, i32
  }
  func.func @transform_16(%arg0: i32) -> (i32, i32) {
    %c0_i32 = arith.constant 0 : i32
    %c0_i32_0 = arith.constant 0 : i32
    %c0_i32_1 = arith.constant 0 : i32
    return %c0_i32, %c0_i32_0 : i32, i32
  }
  func.func @transform_17(%arg0: i32) -> (i32, i32, i32) {
    %c0_i32 = arith.constant 0 : i32
    %c0_i32_0 = arith.constant 0 : i32
    %c0_i32_1 = arith.constant 0 : i32
    return %arg0, %c0_i32, %c0_i32_0 : i32, i32, i32
  }
}

</mosaic_0001>

<bundles_post_ra>
// kernel: transformer_forward.1
= control target key start
LH: loop header
LB: loop body
LE: loop exit
PB: predicated region body
PF: predicated region fallthrough
CT: control target
= control target key end

     0   :  { %s2530_s24 = smov 0   ;;  %s2843_s0 = inlined_call_operand.vmem [shape: s32[2,8,1], index: 0, kind: input, shape index: {}]   ;;  %s2844_s1 = inlined_call_operand.vmem [shape: f32[8,32], index: 1, kind: input, shape index: {}]   ;;  %s2845_s2 = inlined_call_operand.vmem [shape: bf16[16,32], index: 2, kind: input, shape index: {}]   ;;  %s2846_s3 = inlined_call_operand.vmem [shape: bf16[2,32,96], index: 3, kind: input, shape index: {}]   ;;  %s2847_s4 = inlined_call_operand.vmem [shape: f32[2,1,96], index: 4, kind: input, shape index: {}]   ;;  %s2848_s5 = inlined_call_operand.vmem [shape: bf16[2,32,32], index: 5, kind: input, shape index: {}]   ;;  %s2849_s6 = inlined_call_operand.vmem [shape: f32[2,1,32], index: 6, kind: input, shape index: {}]   ;;  %s2850_s7 = inlined_call_operand.vmem [shape: bf16[2,32,128], index: 7, kind: input, shape index: {}]   ;;  %s2851_s8 = inlined_call_operand.vmem [shape: f32[2,1,128], index: 8, kind: input, shape index: {}]   ;;  %s2852_s9 = inlined_call_operand.vmem [shape: bf16[2,128,32], index: 9, kind: input, shape index: {}]   ;;  %s2853_s10 = inlined_call_operand.vmem [shape: f32[2,1,32], index: 10, kind: input, shape index: {}]   ;;  %s2854_s11 = inlined_call_operand.vmem [shape: f32[2,1,32], index: 11, kind: input, shape index: {}]   ;;  %s2855_s12 = inlined_call_operand.vmem [shape: f32[2,1,32], index: 12, kind: input, shape index: {}]   ;;  %s2856_s13 = inlined_call_operand.vmem [shape: f32[2,1,32], index: 13, kind: input, shape index: {}]   ;;  %s2857_s14 = inlined_call_operand.vmem [shape: f32[2,1,32], index: 14, kind: input, shape index: {}]   ;;  %s2858_s15 = inlined_call_operand.vmem [shape: bf16[32,128], index: 15, kind: input, shape index: {}]   ;;  %s2859_s16 = inlined_call_operand.vmem [shape: f32[1,128], index: 16, kind: input, shape index: {}]   ;;  %s2860_s17 = inlined_call_operand.vmem [shape: f32[2,8,128], index: 17, kind: output, shape index: {}]  }
   0x1   :  { %2862 = sst [smem:[#allocation2_spill]] %s2843_s0 }
   0x2   :  { %2863 = sst [smem:[#allocation3_spill]] %s2844_s1 }
   0x3 LB: > { %s2023_s25 = sadd.s32 4294967295, %s2430_s24   ;;  %p2027_p0 = scmp.ge.s32.totalorder %s2430_s24, 1  ;;  %s2430_s24 = sphi %s2530_s24, %s27_s24  }
   0x4   : > { %p486_p1 = scmp.lt.s32.totalorder %s2430_s24, 3 }
   0x6   : > { %p487_p2 = pnand %p2027_p0, %p486_p1 }
   0x7   : > { %p536_p3 = scmp.lt.s32.totalorder (!%p487_p2), %s2023_s25, 1  ;;  %v2432_v0 = vmov (!%p487_p2), 0   ;;  %v2433_v1 = vmov (!%p487_p2), 0.0   ;;  %s2864_s29 = sld [smem:[#allocation2_spill]] (!%p487_p2)  ;;  %v2369_v3 = vld [vmem:[%s2845_s2] sm:$0xff] (!%p487_p2)   ;;  %vm2434_vm0 = vmmov (!%p487_p2), 0   ;;  %v546_v4 = vlaneseq (!%p487_p2) }
   0x8   : > { %490 = sbr.rel (%p487_p2) target bundleno = 5852 (0x16dc), region = 88  ;;  %2368 = vset.pattern.permute.xlu0 (!%p487_p2), %v2432_v0  ;;  %2194 = vmatprep.subr.bf16.mxu0 (!%p487_p2), %v2433_v1  ;;  %vm564_vm2 = vcmask (!%p487_p2), 130048   ;;  %v2370_v8 = vld [vmem:[%s2846_s3] sm:$0xff] (!%p487_p2)   ;;  %v2371_v10 = vld [vmem:[%s2846_s3 + $0x8] sm:$0xff] (!%p487_p2)   ;;  %s2865_s27 = sld [smem:[#allocation3_spill]] (!%p487_p2)  ;;  %vm632_vm3 = vcmask (!%p487_p2), 261120  }
   0x9   : > { %2214 = vmatprep.subr.bf16.mxu1 (!%p487_p2), %v2433_v1  ;;  %2195 = vmatpush3.bf16.msra.mxu0 (!%p487_p2), %v2369_v3  ;;  %v547_v5 = vand.u32 (!%p487_p2), 127, %v546_v4  ;;  %v2033_v18 = vld [vmem:[%s2847_s4] ss:$0 sm:$0xff] (!%p487_p2)  ;;  %s2436_s30 = smov (!%p487_p2), 96   ;;  %s2437_s18 = smov (!%p487_p2), 112   ;;  %vm730_vm4 = vcmask (!%p487_p2), 64512  }
   0xa   : > { %2200 = vmatprep.subr.bf16.mxu0 (!%p487_p2), %v2433_v1  ;;  %2196 = vmatprep.mubr.msk.bf16.mxu0 (!%p487_p2), %vm2434_vm0, %v2433_v1  ;;  %s2438_s19 = smov (!%p487_p2), 64   ;;  %vm748_vm5 = vcmask (!%p487_p2), 1043456   ;;  %s2439_s1 = smov (!%p487_p2), 48   ;;  %v2372_v62 = vld [vmem:[%s2848_s5] sm:$0xff] (!%p487_p2)   ;;  %v2373_v63 = vld [vmem:[%s2848_s5 + $0x8] sm:$0xff] (!%p487_p2)  }
   0xb   : > { %2216 = vmatprep.mubr.msk.bf16.mxu1 (!%p487_p2), %vm2434_vm0, %v2433_v1 }
   0xe   : > { %v557_v11 = vld [vmem:[%s2865_s27] sm:$0xff] (!%p487_p2) }
   0xf   : > { %s2868_s25 = smov (!%p536_p3, %s2023_s25), 1 }
  0x10   : > { %s2861_s26 = sshll.u32 %s2868_s25, 3  ;;  %s2866_s27 = sshll.u32 %s2868_s25, 3 }
  0x11   : > { %s539_s0 = scalar_lea.vmem %s2864_s29, %s2861_s26  ;;  %s543_s20 = scalar_lea.vmem %s2860_s17, %s2866_s27 }
  0x12   : > { %v545_v2 = vld [vmem:[%s539_s0] sm:$0xff]  ;;  %s2435_s0 = smov 80  }
  0x13   : > { %549 = vperm.xlu0 %2368, %v545_v2  }
  0x92   : > { %v550_v6 = vpop.permute.xlu0 %549 }
  0x93   : > { %vm551_vm1 = vcmp.eq.s32.totalorder %v547_v5, %v550_v6 }
  0x94   : > { %v2030_v7 = vsel %vm551_vm1, 1.0, %v2433_v1 }
  0x95   : > { %v554_v9 = vpack.c.bf16 %v2030_v7, %v2030_v7 }
  0x97   : > { %2197 = vmatmul.mubr.msk.bf16.vlgmr.msra.gmra.mrb[0].mxu0 %vm564_vm2, %v554_v9 }
  0x98   : > { %2201 = vmatpush3.bf16.msra.mxu0 %v2370_v8  ;;  %2204 = vmatprep.mubr.msk.bf16.mxu0 %vm2434_vm0, %v2433_v1 }
  0x99   : > { %2202 = vmatprep.subr.bf16.mxu0 %v2433_v1 }
  0x9c   : > { %2203 = vmatpush3.bf16.msra.mxu0 %v2371_v10 }
  0x9d   : > { %2208 = vmatprep.subr.bf16.mxu0 %v2433_v1 }
 0x16a   : > { %v602_v12 = vpop.f32.mrb[0].mxu0 }
 0x16b   : > { %v2571_v13 = vadd.f32 %v602_v12, %v557_v11  ;;  %v2198_v14 = vpop.f32.mrb[1].mxu0 }
 0x16c   : > { %v605_v15 = vpop.f32.mrb[2].mxu0 }
 0x16d   : > { %v608_v16 = vpack.c.bf16 %v2571_v13, %v2571_v13  ;;  %v2199_v17 = vpop.f32.mrb[3].mxu0 }
 0x16e   : > { %v2045_v17 = vld [vmem:[%s2849_s6] ss:$0 sm:$0xff] }
 0x16f   : > { %2205 = vmatmul.mubr.msk.bf16.vlgmr.msra.gmra.mrb[4].mxu0 %vm632_vm3, %v608_v16 }
 0x170   : > { %2210 = vmatprep.mubr.msk.bf16.mxu0 %vm2434_vm0, %v2433_v1 }
 0x242   : > { %v670_v19 = vpop.f32.mrb[4].mxu0 }
 0x243   : > { %v671_v20 = vadd.f32 %v2033_v18, %v670_v19  ;;  %v2206_v21 = vpop.f32.mrb[5].mxu0 }
 0x244   : > { %v673_v22 = vpop.f32.mrb[6].mxu0 }
 0x245   : > { %v680_v23 = vpack.c.bf16 %v671_v20, %v671_v20  ;;  %v2207_v24 = vpop.f32.mrb[7].mxu0 }
 0x247   : > { %795 = vrot.lane.b32.xlu1 %v680_v23, %s2435_s0  ;;  %682 = vrot.lane.b32.xlu0 %v680_v23, %s2436_s30 }
 0x24b   : > { %793 = vrot.lane.b32.xlu1 %v680_v23, %s2437_s18 }
 0x2b9   : > { %v683_v25 = vpop.permute.xlu0 %682  ;;  %v796_v27 = vpop.permute.xlu1 %795 }
 0x2ba   : > { %v688_v26 = vsel %vm564_vm2, %v683_v25, 0  ;;  %v801_v28 = vsel %vm564_vm2, %v796_v27, 0 }
 0x2bb   : > { %2209 = vmatpush3.bf16.xpose.msra.mxu0 %v688_v26 }
 0x2bc   : > { %2220 = vmatprep.subr.bf16.mxu0 %v2433_v1 }
 0x2bd   : > { %v794_v29 = vpop.permute.xlu1 %793 }
 0x2c2   : > { %2211 = vmatmul.mubr.msk.bf16.vlgmr.msra.gmra.mrb[8].mxu0 %vm564_vm2, %v680_v23 }
 0x2c3   : > { %2221 = vmatpush3.bf16.xpose.msra.mxu0 %v801_v28  ;;  %2222 = vmatprep.mubr.msk.bf16.mxu0 %vm2434_vm0, %v2433_v1 }
 0x2c4   : > { %2232 = vmatprep.subr.bf16.mxu0 %v2433_v1 }
 0x2ca   : > { %2223 = vmatmul.mubr.msk.bf16.vlgmr.msra.gmra.mrb[12].mxu0 %vm564_vm2, %v794_v29 }
 0x2cb   : > { %2234 = vmatprep.mubr.msk.bf16.mxu0 %vm2434_vm0, %v2433_v1  ;;  %2233 = vmatpush3.bf16.msra.mxu0 %v2373_v63 }
 0x2cc   : > { %2244 = vmatprep.subr.bf16.mxu0 %v2433_v1 }
 0x395   : > { %v724_v30 = vpop.f32.mrb[8].mxu0 }
 0x396   : > { %v2212_v31 = vpop.f32.mrb[9].mxu0  ;;  %v731_v32 = vsel %vm730_vm4, %v724_v30, -inf }
 0x397   : > { %732 = vmax.xlane.f32.xlu0 %v731_v32  ;;  %v727_v33 = vpop.f32.mrb[10].mxu0  ;;  %v2375_v31 = vld [vmem:[%s2850_s7 + $0x8] sm:$0xff]  }
 0x398   : > { %v2213_v34 = vpop.f32.mrb[11].mxu0  ;;  %v2377_v32 = vld [vmem:[%s2852_s9 + $0x8] sm:$0xff]   ;;  %v2378_v33 = vld [vmem:[%s2852_s9 + $0x10] sm:$0xff]  }
 0x399   : > { %v2379_v34 = vld [vmem:[%s2852_s9 + $0x18] sm:$0xff]  }
 0x39d   : > { %v837_v35 = vpop.f32.mrb[12].mxu0 }
 0x39e   : > { %v2224_v36 = vpop.f32.mrb[13].mxu0  ;;  %v843_v37 = vsel %vm730_vm4, %v837_v35, -inf }
 0x39f   : > { %844 = vmax.xlane.f32.xlu1 %v843_v37  ;;  %v840_v38 = vpop.f32.mrb[14].mxu0  ;;  %v2381_v36 = vld [vmem:[%s2852_s9 + $0x28] sm:$0xff]  }
 0x3a0   : > { %v2225_v39 = vpop.f32.mrb[15].mxu0 }
 0x3b0   : > { %743 = vrot.lane.b32.xlu1 %v680_v23, %s2438_s19 }
 0x424   : > { %v733_v40 = vpop.xlane.xlu0 %732 }
 0x425   : > { %v734_v41 = vsub.f32 %v724_v30, %v733_v40  ;;  %v2374_v30 = vld [vmem:[%s2850_s7] sm:$0xff]  }
 0x427   : > { %v735_v42 = vmul.f32 1.442695, %v734_v41  ;;  %v2046_v41 = vld [vmem:[%s2854_s11] ss:$0 sm:$0xff] }
 0x429   : > { %2400 = vpow2.f32 %v735_v42 }
 0x42c   : > { %v845_v43 = vpop.xlane.xlu1 %844 }
 0x42d   : > { %v846_v44 = vsub.f32 %v837_v35, %v845_v43  ;;  %v2380_v35 = vld [vmem:[%s2852_s9 + $0x20] sm:$0xff]  }
 0x42e   : > { %v2047_v43 = vld [vmem:[%s2855_s12] ss:$0 sm:$0xff] }
 0x42f   : > { %v847_v45 = vmul.f32 1.442695, %v846_v44 }
 0x430   : > { %v744_v46 = vpop.permute.xlu1 %743 }
 0x431   : > { %2402 = vpow2.f32 %v847_v45  ;;  %v750_v47 = vsel %vm748_vm5, %v744_v46, 0 }
 0x432   : > { %2215 = vmatpush3.bf16.msra.mxu1 %v750_v47  ;;  %v2382_v47 = vld [vmem:[%s2852_s9 + $0x30] sm:$0xff]  }
 0x433   : > { %v2401_v48 = vpop.eup %2400  ;;  %2226 = vmatprep.subr.bf16.mxu1 %v2433_v1 }
 0x434   : > { %v737_v49 = vsel %vm730_vm4, %v2401_v48, 0.0 }
 0x435   : > { %738 = vadd.xlane.f32.xlu0 %v737_v49  ;;  %v2048_v49 = vld [vmem:[%s2851_s8] ss:$0 sm:$0xff] }
 0x43b   : > { %v2403_v50 = vpop.eup %2402 }
 0x43c   : > { %v849_v51 = vsel %vm730_vm4, %v2403_v50, 0.0 }
 0x43d   : > { %850 = vadd.xlane.f32.xlu0 %v849_v51 }
 0x453   : > { %855 = vrot.lane.b32.xlu0 %v680_v23, %s2439_s1 }
 0x4c2   : > { %v739_v52 = vpop.xlane.xlu0 %738 }
 0x4c3   : > { %2404 = vrcp.f32 %v739_v52 }
 0x4ca   : > { %v851_v53 = vpop.xlane.xlu0 %850 }
 0x4cb   : > { %2406 = vrcp.f32 %v851_v53 }
 0x4cd   : > { %v2405_v54 = vpop.eup %2404 }
 0x4ce   : > { %v741_v55 = vmul.f32 %v2405_v54, %v2401_v48  ;;  %v856_v56 = vpop.permute.xlu0 %855  ;;  %v2383_v48 = vld [vmem:[%s2852_s9 + $0x38] sm:$0xff]  }
 0x4cf   : > { %v861_v58 = vsel %vm748_vm5, %v856_v56, 0 }
 0x4d0   : > { %v742_v57 = vpack.c.bf16 %v741_v55, %v741_v55 }
 0x4d2   : > { %2217 = vmatmul.mubr.msk.bf16.vlgmr.msra.gmra.mrb[0].mxu1 %vm730_vm4, %v742_v57  ;;  %v2052_v57 = vld [vmem:[%s2853_s10] ss:$0 sm:$0xff] }
 0x4d3   : > { %2227 = vmatpush3.bf16.msra.mxu1 %v861_v58  ;;  %2228 = vmatprep.mubr.msk.bf16.mxu1 %vm2434_vm0, %v2433_v1 }
 0x4d4   : > { %2238 = vmatprep.subr.bf16.mxu1 %v2433_v1 }
 0x4d5   : > { %v2407_v59 = vpop.eup %2406 }
 0x4d6   : > { %v853_v60 = vmul.f32 %v2407_v59, %v2403_v50 }
 0x4d8   : > { %v854_v61 = vpack.c.bf16 %v853_v60, %v853_v60 }
 0x4da   : > { %2229 = vmatmul.mubr.msk.bf16.vlgmr.msra.gmra.mrb[4].mxu1 %vm730_vm4, %v854_v61 }
 0x4db   : > { %2240 = vmatprep.mubr.msk.bf16.mxu1 %vm2434_vm0, %v2433_v1  ;;  %2239 = vmatpush3.bf16.msra.mxu1 %v2372_v62 }
 0x4dc   : > { %2252 = vmatprep.subr.bf16.mxu1 %v2433_v1 }
 0x5a5   : > { %v786_v0 = vpop.f32.mrb[0].mxu1 }
 0x5a6   : > { %v792_v2 = vpack.c.bf16 %v786_v0, %v786_v0  ;;  %v2218_v3 = vpop.f32.mrb[1].mxu1 }
 0x5a7   : > { %v789_v4 = vpop.f32.mrb[2].mxu1 }
 0x5a8   : > { %v2219_v5 = vpop.f32.mrb[3].mxu1  ;;  %2241 = vmatmul.mubr.msk.bf16.vlgmr.msra.gmra.mrb[8].mxu1 %vm564_vm2, %v792_v2 }
 0x5a9   : > { %2268 = vmatprep.mubr.msk.bf16.mxu1 %vm2434_vm0, %v2433_v1 }
 0x5ad   : > { %v897_v6 = vpop.f32.mrb[4].mxu1 }
 0x5ae   : > { %v903_v7 = vpack.c.bf16 %v897_v6, %v897_v6  ;;  %v2230_v8 = vpop.f32.mrb[5].mxu1 }
 0x5af   : > { %v900_v9 = vpop.f32.mrb[6].mxu1  ;;  %v2385_v8 = vld [vmem:[%s2846_s3 + $0x18] sm:$0xff]  }
 0x5b0   : > { %v2231_v10 = vpop.f32.mrb[7].mxu1  ;;  %2235 = vmatmul.mubr.msk.bf16.vlgmr.msra.gmra.mrb[16].mxu0 %vm564_vm2, %v903_v7  ;;  %v2384_v7 = vld [vmem:[%s2846_s3 + $0x10] sm:$0xff]  }
 0x5b1   : > { %2248 = vmatprep.mubr.msk.bf16.mxu0 %vm2434_vm0, %v2433_v1  ;;  %2245 = vmatpush3.bf16.msra.mxu0 %v2374_v30 }
 0x5b2   : > { %2246 = vmatprep.subr.bf16.mxu0 %v2433_v1 }
 0x5b5   : > { %2247 = vmatpush3.bf16.msra.mxu0 %v2375_v31 }
 0x5b6   : > { %2272 = vmatprep.subr.bf16.mxu0 %v2433_v1 }
 0x67b   : > { %v996_v11 = vpop.f32.mrb[8].mxu1 }
 0x67c   : > { %v2242_v12 = vpop.f32.mrb[9].mxu1 }
 0x67d   : > { %v999_v14 = vpop.f32.mrb[10].mxu1 }
 0x67e   : > { %v2243_v15 = vpop.f32.mrb[11].mxu1  ;;  %v2061_v14 = vld [vmem:[%s2856_s13] ss:$0 sm:$0xff] }
 0x683   : > { %v947_v16 = vpop.f32.mrb[16].mxu0 }
 0x684   : > { %v997_v18 = vadd.f32 %v996_v11, %v947_v16  ;;  %v2236_v19 = vpop.f32.mrb[17].mxu0  ;;  %v2062_v16 = vld [vmem:[%s2857_s14] ss:$0 sm:$0xff] }
 0x685   : > { %v950_v20 = vpop.f32.mrb[18].mxu0 }
 0x686   : > { %v1009_v21 = vadd.f32 %v2045_v17, %v997_v18  ;;  %v2237_v22 = vpop.f32.mrb[19].mxu0  ;;  %v2068_v20 = vld [vmem:[%s2847_s4 + $0x1] ss:$0 sm:$0xff] }
 0x688   : > { %v1010_v23 = vadd.f32 %v1009_v21, %v2571_v13  ;;  %v2376_v13 = vld [vmem:[%s2852_s9] sm:$0xff]  }
 0x689   : > { %2253 = vmatpush3.bf16.msra.mxu1 %v2376_v13 }
 0x68a   : > { %v1013_v24 = vsel %vm632_vm3, %v1010_v23, 0.0  ;;  %2254 = vmatprep.subr.bf16.mxu1 %v2433_v1 }
 0x68b   : > { %1014 = vadd.xlane.f32.xlu1 %v1013_v24 }
 0x68d   : > { %2255 = vmatpush3.bf16.msra.mxu1 %v2377_v32 }
 0x68e   : > { %2256 = vmatprep.subr.bf16.mxu1 %v2433_v1 }
 0x691   : > { %2257 = vmatpush3.bf16.msra.mxu1 %v2378_v33 }
 0x692   : > { %2258 = vmatprep.subr.bf16.mxu1 %v2433_v1 }
 0x695   : > { %2259 = vmatpush3.bf16.msra.mxu1 %v2379_v34 }
 0x696   : > { %2260 = vmatprep.subr.bf16.mxu1 %v2433_v1 }
 0x699   : > { %2261 = vmatpush3.bf16.msra.mxu1 %v2380_v35 }
 0x69a   : > { %2262 = vmatprep.subr.bf16.mxu1 %v2433_v1 }
 0x69d   : > { %2263 = vmatpush3.bf16.msra.mxu1 %v2381_v36 }
 0x69e   : > { %2264 = vmatprep.subr.bf16.mxu1 %v2433_v1 }
 0x6a1   : > { %2265 = vmatpush3.bf16.msra.mxu1 %v2382_v47 }
 0x6a2   : > { %2266 = vmatprep.subr.bf16.mxu1 %v2433_v1 }
 0x6a5   : > { %2267 = vmatpush3.bf16.msra.mxu1 %v2383_v48 }
 0x6a6   : > { %2298 = vmatprep.subr.bf16.mxu1 %v2433_v1 }
 0x718   : > { %v1015_v25 = vpop.xlane.xlu1 %1014 }
 0x719   : > { %v1017_v26 = vmul.f32 0.03125, %v1015_v25 }
 0x71b   : > { %v1018_v27 = vsub.f32 %v1010_v23, %v1017_v26 }
 0x71d   : > { %v1019_v28 = vmul.f32 %v1018_v27, %v1018_v27 }
 0x71f   : > { %v1020_v29 = vsel %vm632_vm3, %v1019_v28, 0.0 }
 0x720   : > { %1021 = vadd.xlane.f32.xlu0 %v1020_v29 }
 0x7ad   : > { %v1022_v37 = vpop.xlane.xlu0 %1021 }
 0x7ae   : > { %v1023_v38 = vmul.f32 0.03125, %v1022_v37 }
 0x7b0   : > { %v1024_v39 = vadd.f32 1e-05, %v1023_v38 }
 0x7b2   : > { %2408 = vrsqrt.f32 %v1024_v39 }
 0x7bc   : > { %v2409_v40 = vpop.eup %2408 }
 0x7bd   : > { %v1026_v42 = vmul.f32 %v2409_v40, %v1018_v27 }
 0x7bf   : > { %v1033_v44 = vmul.f32 %v2046_v41, %v1026_v42 }
 0x7c1   : > { %v1040_v45 = vadd.f32 %v2047_v43, %v1033_v44 }
 0x7c3   : > { %v1041_v46 = vpack.c.bf16 %v1040_v45, %v1040_v45 }
 0x7c5   : > { %2249 = vmatmul.mubr.msk.bf16.vlgmr.msra.gmra.mrb[20].mxu0 %vm632_vm3, %v1041_v46 }
 0x7c6   : > { %2276 = vmatprep.mubr.msk.bf16.mxu0 %vm2434_vm0, %v2433_v1  ;;  %2273 = vmatpush3.bf16.msra.mxu0 %v2384_v7 }
 0x7c7   : > { %2274 = vmatprep.subr.bf16.mxu0 %v2433_v1 }
 0x7ca   : > { %2275 = vmatpush3.bf16.msra.mxu0 %v2385_v8 }
 0x7cb   : > { %2280 = vmatprep.subr.bf16.mxu0 %v2433_v1 }
 0x898   : > { %v1102_v50 = vpop.f32.mrb[20].mxu0 }
 0x899   : > { %v1103_v51 = vadd.f32 %v2048_v49, %v1102_v50  ;;  %v2250_v52 = vpop.f32.mrb[21].mxu0 }
 0x89a   : > { %v1105_v53 = vpop.f32.mrb[22].mxu0 }
 0x89b   : > { %v1108_v54 = vmax.f32 %v1103_v51, 0.0  ;;  %v2251_v55 = vpop.f32.mrb[23].mxu0 }
 0x89d   : > { %v1109_v56 = vpack.c.bf16 %v1108_v54, %v1108_v54 }
 0x89f   : > { %2269 = vmatmul.mubr.bf16.vlgmr.msra.gmra.mrb[12].mxu1 %v1109_v56 }
 0x8a0   : > { %2300 = vmatprep.mubr.msk.bf16.mxu1 %vm2434_vm0, %v2433_v1 }
 0x972   : > { %v1215_v58 = vpop.f32.mrb[12].mxu1 }
 0x973   : > { %v1216_v59 = vadd.f32 %v2052_v57, %v1215_v58  ;;  %v2270_v60 = vpop.f32.mrb[13].mxu1 }
 0x974   : > { %v1218_v61 = vpop.f32.mrb[14].mxu1 }
 0x975   : > { %v2271_v62 = vpop.f32.mrb[15].mxu1  ;;  %v1221_v63 = vadd.f32 %v1216_v59, %v1040_v45 }
 0x977   : > { %v1224_v0 = vsel %vm632_vm3, %v1221_v63, 0.0 }
 0x978   : > { %1225 = vadd.xlane.f32.xlu1 %v1224_v0 }
 0xa05   : > { %v1226_v2 = vpop.xlane.xlu1 %1225 }
 0xa06   : > { %v1227_v3 = vmul.f32 0.03125, %v1226_v2 }
 0xa08   : > { %v1228_v4 = vsub.f32 %v1221_v63, %v1227_v3  ;;  %v2387_v63 = vld [vmem:[%s2848_s5 + $0x18] sm:$0xff]  }
 0xa0a   : > { %v1229_v5 = vmul.f32 %v1228_v4, %v1228_v4 }
 0xa0c   : > { %v1230_v6 = vsel %vm632_vm3, %v1229_v5, 0.0 }
 0xa0d   : > { %1231 = vadd.xlane.f32.xlu0 %v1230_v6 }
 0xa9a   : > { %v1232_v9 = vpop.xlane.xlu0 %1231 }
 0xa9b   : > { %v1233_v10 = vmul.f32 0.03125, %v1232_v9 }
 0xa9d   : > { %v1234_v11 = vadd.f32 1e-05, %v1233_v10 }
 0xa9f   : > { %2410 = vrsqrt.f32 %v1234_v11 }
 0xaa9   : > { %v2411_v12 = vpop.eup %2410 }
 0xaaa   : > { %v1236_v15 = vmul.f32 %v2411_v12, %v1228_v4  ;;  %v2386_v4 = vld [vmem:[%s2848_s5 + $0x10] sm:$0xff]  }
 0xaac   : > { %v1243_v17 = vmul.f32 %v2061_v14, %v1236_v15 }
 0xaae   : > { %v2703_v18 = vadd.f32 %v2062_v16, %v1243_v17 }
 0xab0   : > { %v1251_v19 = vpack.c.bf16 %v2703_v18, %v2703_v18 }
 0xab2   : > { %2277 = vmatmul.mubr.msk.bf16.vlgmr.msra.gmra.mrb[24].mxu0 %vm632_vm3, %v1251_v19  ;;  %v2085_v19 = vld [vmem:[%s2849_s6 + $0x1] ss:$0 sm:$0xff] }
 0xab3   : > { %2282 = vmatprep.mubr.msk.bf16.mxu0 %vm2434_vm0, %v2433_v1 }
 0xb85   : > { %v1314_v21 = vpop.f32.mrb[24].mxu0 }
 0xb86   : > { %v1315_v22 = vadd.f32 %v2068_v20, %v1314_v21  ;;  %v2278_v23 = vpop.f32.mrb[25].mxu0 }
 0xb87   : > { %v1317_v24 = vpop.f32.mrb[26].mxu0 }
 0xb88   : > { %v1325_v25 = vpack.c.bf16 %v1315_v22, %v1315_v22  ;;  %v2279_v26 = vpop.f32.mrb[27].mxu0 }
 0xb8a   : > { %1327 = vrot.lane.b32.xlu1 %v1325_v25, %s2436_s30 }
 0xb8e   : > { %1438 = vrot.lane.b32.xlu1 %v1325_v25, %s2435_s0 }
 0xb92   : > { %1436 = vrot.lane.b32.xlu1 %v1325_v25, %s2437_s18 }
 0xbfc   : > { %v1328_v27 = vpop.permute.xlu1 %1327 }
 0xbfd   : > { %v1333_v28 = vsel %vm564_vm2, %v1328_v27, 0 }
 0xbfe   : > { %2281 = vmatpush3.bf16.xpose.msra.mxu0 %v1333_v28 }
 0xbff   : > { %2286 = vmatprep.subr.bf16.mxu0 %v2433_v1 }
 0xc00   : > { %v1439_v43 = vpop.permute.xlu1 %1438 }
 0xc01   : > { %v1444_v45 = vsel %vm564_vm2, %v1439_v43, 0 }
 0xc04   : > { %v1437_v46 = vpop.permute.xlu1 %1436 }
 0xc05   : > { %2283 = vmatmul.mubr.msk.bf16.vlgmr.msra.gmra.mrb[28].mxu0 %vm564_vm2, %v1325_v25 }
 0xc06   : > { %2288 = vmatprep.mubr.msk.bf16.mxu0 %vm2434_vm0, %v2433_v1 }
 0xcd8   : > { %v1369_v29 = vpop.f32.mrb[28].mxu0 }
 0xcd9   : > { %v2284_v30 = vpop.f32.mrb[29].mxu0  ;;  %v1375_v31 = vsel %vm730_vm4, %v1369_v29, -inf }
 0xcda   : > { %1376 = vmax.xlane.f32.xlu0 %v1375_v31  ;;  %v1372_v13 = vpop.f32.mrb[30].mxu0 }
 0xcdb   : > { %v2285_v32 = vpop.f32.mrb[31].mxu0  ;;  %v2388_v13 = vld [vmem:[%s2850_s7 + $0x10] sm:$0xff]  }
 0xcdc   : > { %v2389_v32 = vld [vmem:[%s2850_s7 + $0x18] sm:$0xff]  }
 0xd67   : > { %v1377_v33 = vpop.xlane.xlu0 %1376 }
 0xd68   : > { %v1378_v34 = vsub.f32 %v1369_v29, %v1377_v33  ;;  %v2391_v33 = vld [vmem:[%s2852_s9 + $0x48] sm:$0xff]  }
 0xd6a   : > { %v1379_v35 = vmul.f32 1.442695, %v1378_v34  ;;  %v2392_v34 = vld [vmem:[%s2852_s9 + $0x50] sm:$0xff]  }
 0xd6c   : > { %2412 = vpow2.f32 %v1379_v35  ;;  %v2393_v35 = vld [vmem:[%s2852_s9 + $0x58] sm:$0xff]  }
 0xd76   : > { %v2413_v36 = vpop.eup %2412 }
 0xd77   : > { %v1381_v37 = vsel %vm730_vm4, %v2413_v36, 0.0 }
 0xd78   : > { %1382 = vadd.xlane.f32.xlu0 %v1381_v37  ;;  %v2395_v37 = vld [vmem:[%s2852_s9 + $0x68] sm:$0xff]  }
 0xd8e   : > { %1387 = vrot.lane.b32.xlu0 %v1325_v25, %s2438_s19 }
 0xe05   : > { %v1383_v38 = vpop.xlane.xlu0 %1382 }
 0xe06   : > { %2414 = vrcp.f32 %v1383_v38 }
 0xe09   : > { %v1388_v39 = vpop.permute.xlu0 %1387 }
 0xe0a   : > { %v1393_v40 = vsel %vm748_vm5, %v1388_v39, 0 }
 0xe0b   : > { %2287 = vmatpush3.bf16.msra.mxu0 %v1393_v40 }
 0xe0c   : > { %2292 = vmatprep.subr.bf16.mxu0 %v2433_v1 }
 0xe10   : > { %v2415_v41 = vpop.eup %2414 }
 0xe11   : > { %v1385_v42 = vmul.f32 %v2415_v41, %v2413_v36  ;;  %v2394_v36 = vld [vmem:[%s2852_s9 + $0x60] sm:$0xff]  }
 0xe13   : > { %v1386_v44 = vpack.c.bf16 %v1385_v42, %v1385_v42  ;;  %v2088_v42 = vld [vmem:[%s2854_s11 + $0x1] ss:$0 sm:$0xff] }
 0xe15   : > { %2289 = vmatmul.mubr.msk.bf16.vlgmr.msra.gmra.mrb[32].mxu0 %vm730_vm4, %v1386_v44  ;;  %v2089_v44 = vld [vmem:[%s2855_s12 + $0x1] ss:$0 sm:$0xff] }
 0xe16   : > { %2293 = vmatpush3.bf16.xpose.msra.mxu0 %v1444_v45  ;;  %2294 = vmatprep.mubr.msk.bf16.mxu0 %vm2434_vm0, %v2433_v1 }
 0xe17   : > { %2304 = vmatprep.subr.bf16.mxu0 %v2433_v1 }
 0xe1d   : > { %2295 = vmatmul.mubr.msk.bf16.vlgmr.msra.gmra.mrb[36].mxu0 %vm564_vm2, %v1437_v46 }
 0xe1e   : > { %2306 = vmatprep.mubr.msk.bf16.mxu0 %vm2434_vm0, %v2433_v1  ;;  %2305 = vmatpush3.bf16.msra.mxu0 %v2387_v63 }
 0xe1f   : > { %2316 = vmatprep.subr.bf16.mxu0 %v2433_v1 }
 0xee8   : > { %v1429_v47 = vpop.f32.mrb[32].mxu0 }
 0xee9   : > { %v2290_v48 = vpop.f32.mrb[33].mxu0  ;;  %v1435_v6 = vpack.c.bf16 %v1429_v47, %v1429_v47 }
 0xeea   : > { %v1432_v49 = vpop.f32.mrb[34].mxu0  ;;  %v2396_v48 = vld [vmem:[%s2852_s9 + $0x70] sm:$0xff]  }
 0xeeb   : > { %v2291_v50 = vpop.f32.mrb[35].mxu0  ;;  %v2397_v49 = vld [vmem:[%s2852_s9 + $0x78] sm:$0xff]  }
 0xeec   : > { %v2095_v50 = vld [vmem:[%s2851_s8 + $0x1] ss:$0 sm:$0xff] }
 0xef0   : > { %v1480_v51 = vpop.f32.mrb[36].mxu0 }
 0xef1   : > { %v2296_v52 = vpop.f32.mrb[37].mxu0  ;;  %v1486_v53 = vsel %vm730_vm4, %v1480_v51, -inf }
 0xef2   : > { %1487 = vmax.xlane.f32.xlu1 %v1486_v53  ;;  %v1483_v54 = vpop.f32.mrb[38].mxu0 }
 0xef3   : > { %v2297_v55 = vpop.f32.mrb[39].mxu0 }
 0xf03   : > { %1498 = vrot.lane.b32.xlu1 %v1325_v25, %s2439_s1 }
 0xf7f   : > { %v1488_v56 = vpop.xlane.xlu1 %1487 }
 0xf80   : > { %v1489_v57 = vsub.f32 %v1480_v51, %v1488_v56 }
 0xf82   : > { %v1490_v58 = vmul.f32 1.442695, %v1489_v57 }
 0xf83   : > { %v1499_v59 = vpop.permute.xlu1 %1498 }
 0xf84   : > { %2416 = vpow2.f32 %v1490_v58  ;;  %v1504_v60 = vsel %vm748_vm5, %v1499_v59, 0  ;;  %v2116_v58 = vld [vmem:[%s2853_s10 + $0x1] ss:$0 sm:$0xff] }
 0xf85   : > { %2299 = vmatpush3.bf16.msra.mxu1 %v1504_v60 }
 0xf86   : > { %2310 = vmatprep.subr.bf16.mxu1 %v2433_v1 }
 0xf8e   : > { %v2417_v61 = vpop.eup %2416 }
 0xf8f   : > { %v1492_v62 = vsel %vm730_vm4, %v2417_v61, 0.0 }
 0xf90   : > { %1493 = vadd.xlane.f32.xlu0 %v1492_v62 }
0x101d   : > { %v1494_v0 = vpop.xlane.xlu0 %1493 }
0x101e   : > { %2418 = vrcp.f32 %v1494_v0 }
0x1028   : > { %v2419_v2 = vpop.eup %2418 }
0x1029   : > { %v1496_v3 = vmul.f32 %v2419_v2, %v2417_v61 }
0x102b   : > { %v1497_v5 = vpack.c.bf16 %v1496_v3, %v1496_v3 }
0x102d   : > { %2301 = vmatmul.mubr.msk.bf16.vlgmr.msra.gmra.mrb[16].mxu1 %vm730_vm4, %v1497_v5 }
0x102e   : > { %2311 = vmatpush3.bf16.msra.mxu1 %v2386_v4  ;;  %2312 = vmatprep.mubr.msk.bf16.mxu1 %vm2434_vm0, %v2433_v1 }
0x102f   : > { %2324 = vmatprep.subr.bf16.mxu1 %v2433_v1 }
0x1035   : > { %2313 = vmatmul.mubr.msk.bf16.vlgmr.msra.gmra.mrb[20].mxu1 %vm564_vm2, %v1435_v6 }
0x1036   : > { %2340 = vmatprep.mubr.msk.bf16.mxu1 %vm2434_vm0, %v2433_v1 }
0x1100   : > { %v1540_v7 = vpop.f32.mrb[16].mxu1 }
0x1101   : > { %v1546_v8 = vpack.c.bf16 %v1540_v7, %v1540_v7  ;;  %v2302_v9 = vpop.f32.mrb[17].mxu1 }
0x1102   : > { %v1543_v10 = vpop.f32.mrb[18].mxu1  ;;  %v2399_v9 = vld [vmem:[%s2858_s15 + $0x8] sm:$0xff]  }
0x1103   : > { %v2303_v11 = vpop.f32.mrb[19].mxu1  ;;  %2307 = vmatmul.mubr.msk.bf16.vlgmr.msra.gmra.mrb[40].mxu0 %vm564_vm2, %v1546_v8  ;;  %v2398_v8 = vld [vmem:[%s2858_s15] sm:$0xff]  }
0x1104   : > { %2320 = vmatprep.mubr.msk.bf16.mxu0 %vm2434_vm0, %v2433_v1  ;;  %2317 = vmatpush3.bf16.msra.mxu0 %v2388_v13 }
0x1105   : > { %2318 = vmatprep.subr.bf16.mxu0 %v2433_v1 }
0x1108   : > { %v1639_v12 = vpop.f32.mrb[20].mxu1  ;;  %2319 = vmatpush3.bf16.msra.mxu0 %v2389_v32 }
0x1109   : > { %v2314_v14 = vpop.f32.mrb[21].mxu1  ;;  %2344 = vmatprep.subr.bf16.mxu0 %v2433_v1 }
0x110a   : > { %v1642_v15 = vpop.f32.mrb[22].mxu1 }
0x110b   : > { %v2315_v16 = vpop.f32.mrb[23].mxu1  ;;  %v2127_v15 = vld [vmem:[%s2856_s13 + $0x1] ss:$0 sm:$0xff] }
0x11d6   : > { %v1590_v17 = vpop.f32.mrb[40].mxu0 }
0x11d7   : > { %v1640_v20 = vadd.f32 %v1639_v12, %v1590_v17  ;;  %v2308_v21 = vpop.f32.mrb[41].mxu0  ;;  %v2128_v17 = vld [vmem:[%s2857_s14 + $0x1] ss:$0 sm:$0xff] }
0x11d8   : > { %v1593_v22 = vpop.f32.mrb[42].mxu0 }
0x11d9   : > { %v1653_v23 = vadd.f32 %v2085_v19, %v1640_v20  ;;  %v2309_v24 = vpop.f32.mrb[43].mxu0 }
0x11db   : > { %v1654_v25 = vadd.f32 %v1653_v23, %v2703_v18  ;;  %v2390_v18 = vld [vmem:[%s2852_s9 + $0x40] sm:$0xff]  }
0x11dc   : > { %2325 = vmatpush3.bf16.msra.mxu1 %v2390_v18 }
0x11dd   : > { %v1659_v26 = vsel %vm632_vm3, %v1654_v25, 0.0  ;;  %2326 = vmatprep.subr.bf16.mxu1 %v2433_v1 }
0x11de   : > { %1660 = vadd.xlane.f32.xlu0 %v1659_v26 }
0x11e0   : > { %2327 = vmatpush3.bf16.msra.mxu1 %v2391_v33 }
0x11e1   : > { %2328 = vmatprep.subr.bf16.mxu1 %v2433_v1 }
0x11e4   : > { %2329 = vmatpush3.bf16.msra.mxu1 %v2392_v34 }
0x11e5   : > { %2330 = vmatprep.subr.bf16.mxu1 %v2433_v1 }
0x11e8   : > { %2331 = vmatpush3.bf16.msra.mxu1 %v2393_v35 }
0x11e9   : > { %2332 = vmatprep.subr.bf16.mxu1 %v2433_v1 }
0x11ec   : > { %2333 = vmatpush3.bf16.msra.mxu1 %v2394_v36 }
0x11ed   : > { %2334 = vmatprep.subr.bf16.mxu1 %v2433_v1 }
0x11f0   : > { %2335 = vmatpush3.bf16.msra.mxu1 %v2395_v37 }
0x11f1   : > { %2336 = vmatprep.subr.bf16.mxu1 %v2433_v1 }
0x11f4   : > { %2337 = vmatpush3.bf16.msra.mxu1 %v2396_v48 }
0x11f5   : > { %2338 = vmatprep.subr.bf16.mxu1 %v2433_v1 }
0x11f8   : > { %2339 = vmatpush3.bf16.msra.mxu1 %v2397_v49 }
0x126b   : > { %v1661_v27 = vpop.xlane.xlu0 %1660 }
0x126c   : > { %v1662_v28 = vmul.f32 0.03125, %v1661_v27 }
0x126e   : > { %v1663_v29 = vsub.f32 %v1654_v25, %v1662_v28 }
0x1270   : > { %v1664_v30 = vmul.f32 %v1663_v29, %v1663_v29 }
0x1272   : > { %v1665_v31 = vsel %vm632_vm3, %v1664_v30, 0.0 }
0x1273   : > { %1666 = vadd.xlane.f32.xlu0 %v1665_v31 }
0x1300   : > { %v1667_v38 = vpop.xlane.xlu0 %1666 }
0x1301   : > { %v1668_v39 = vmul.f32 0.03125, %v1667_v38 }
0x1303   : > { %v1669_v40 = vadd.f32 1e-05, %v1668_v39 }
0x1305   : > { %2420 = vrsqrt.f32 %v1669_v40 }
0x130f   : > { %v2421_v41 = vpop.eup %2420 }
0x1310   : > { %v1671_v43 = vmul.f32 %v2421_v41, %v1663_v29 }
0x1312   : > { %v1678_v45 = vmul.f32 %v2088_v42, %v1671_v43 }
0x1314   : > { %v1685_v46 = vadd.f32 %v2089_v44, %v1678_v45 }
0x1316   : > { %v1686_v47 = vpack.c.bf16 %v1685_v46, %v1685_v46 }
0x1318   : > { %2321 = vmatmul.mubr.msk.bf16.vlgmr.msra.gmra.mrb[44].mxu0 %vm632_vm3, %v1686_v47 }
0x1319   : > { %2348 = vmatprep.mubr.msk.bf16.mxu0 %vm2434_vm0, %v2433_v1  ;;  %2345 = vmatpush3.bf16.msra.mxu0 %v2398_v8 }
0x131a   : > { %2346 = vmatprep.subr.bf16.mxu0 %v2433_v1  ;;  %v2129_v1 = vld [vmem:[%s2859_s16] ss:$0 sm:$0xff] }
0x131d   : > { %2347 = vmatpush3.bf16.msra.mxu0 %v2399_v9 }
0x13eb   : > { %v1749_v51 = vpop.f32.mrb[44].mxu0 }
0x13ec   : > { %v1750_v52 = vadd.f32 %v2095_v50, %v1749_v51  ;;  %v2322_v53 = vpop.f32.mrb[45].mxu0 }
0x13ed   : > { %v1752_v54 = vpop.f32.mrb[46].mxu0 }
0x13ee   : > { %v1755_v55 = vmax.f32 %v1750_v52, 0.0  ;;  %v2323_v56 = vpop.f32.mrb[47].mxu0 }
0x13f0   : > { %v1756_v57 = vpack.c.bf16 %v1755_v55, %v1755_v55 }
0x13f2   : > { %2341 = vmatmul.mubr.bf16.vlgmr.msra.gmra.mrb[24].mxu1 %v1756_v57 }
0x14c5   : > { %v1864_v59 = vpop.f32.mrb[24].mxu1 }
0x14c6   : > { %v1865_v60 = vadd.f32 %v2116_v58, %v1864_v59  ;;  %v2342_v61 = vpop.f32.mrb[25].mxu1 }
0x14c7   : > { %v1867_v62 = vpop.f32.mrb[26].mxu1 }
0x14c8   : > { %v2343_v63 = vpop.f32.mrb[27].mxu1  ;;  %v1870_v0 = vadd.f32 %v1865_v60, %v1685_v46 }
0x14ca   : > { %v1875_v2 = vsel %vm632_vm3, %v1870_v0, 0.0 }
0x14cb   : > { %1876 = vadd.xlane.f32.xlu0 %v1875_v2 }
0x1558   : > { %v1877_v3 = vpop.xlane.xlu0 %1876 }
0x1559   : > { %v1878_v4 = vmul.f32 0.03125, %v1877_v3 }
0x155b   : > { %v1879_v5 = vsub.f32 %v1870_v0, %v1878_v4 }
0x155d   : > { %v1880_v6 = vmul.f32 %v1879_v5, %v1879_v5 }
0x155f   : > { %v1881_v7 = vsel %vm632_vm3, %v1880_v6, 0.0 }
0x1560   : > { %1882 = vadd.xlane.f32.xlu0 %v1881_v7 }
0x15ed   : > { %v1883_v10 = vpop.xlane.xlu0 %1882 }
0x15ee   : > { %v1884_v11 = vmul.f32 0.03125, %v1883_v10 }
0x15f0   : > { %v1885_v12 = vadd.f32 1e-05, %v1884_v11 }
0x15f2   : > { %2422 = vrsqrt.f32 %v1885_v12 }
0x15fc   : > { %v2423_v14 = vpop.eup %2422 }
0x15fd   : > { %v1887_v16 = vmul.f32 %v2423_v14, %v1879_v5 }
0x15ff   : > { %v1894_v19 = vmul.f32 %v2127_v15, %v1887_v16 }
0x1601   : > { %v1901_v20 = vadd.f32 %v2128_v17, %v1894_v19 }
0x1603   : > { %v1902_v21 = vpack.c.bf16 %v1901_v20, %v1901_v20 }
0x1605   : > { %2349 = vmatmul.mubr.msk.bf16.vlgmr.msra.gmra.mrb[48].mxu0 %vm632_vm3, %v1902_v21 }
0x16d8   : > { %v1963_v22 = vpop.f32.mrb[48].mxu0 }
0x16d9   : > { %v1964_v23 = vadd.f32 %v2129_v1, %v1963_v22  ;;  %v2350_v24 = vpop.f32.mrb[49].mxu0 }
0x16da   : > { %v1966_v25 = vpop.f32.mrb[50].mxu0 }
0x16db   : > { %1969 = vst [vmem:[%s543_s20] sm:$0xff] %v1964_v23  ;;  %v2351_v26 = vpop.f32.mrb[51].mxu0 }
0x16dc PF: > { %s27_s24 = sadd.s32 1, %s2430_s24  }
0x16dd   : > { %p24_p4 = scmp.ge.s32.totalorder %s27_s24, 4  }
0x16df   :  { %26 = sbr.rel (!%p24_p4) target bundleno = 3 (0x3), region = 130 }

</bundles_post_ra>
